<compile_context>
chip_gen: v6e
topology: v6e:2x2x1
jax: 0.10.0
libtpu: 0.0.40
codegen_flags: <defaults>
</compile_context>

<pallas_src>
import jax
import jax.numpy as jnp
from jax import lax
from jax.experimental import pallas as pl
from jax.experimental.pallas import tpu as pltpu


N_FEATURES = 2
N_HIDDEN = 20
SEQ_LEN = 8
BATCH = 4

H_PAD = 128   # per-gate lane-padded hidden width (one full lane tile per gate)
F_PAD = 8     # padded contraction dim for the hoisted input projection


def mv_lstm_kernel(x_ref, wih_ref, whh_ref, b_ref, wlin_ref, blin_ref,
                   out_ref, xp_ref):
    # x_ref:    (T*Bp, Fp)    time-major, batch padded to Bp, features padded to Fp
    # wih_ref:  (Fp, 4*Hp)    W_ih^T, gate order (i, f, o, g), zero pad lanes/rows
    # whh_ref:  (Hp, 4*Hp)    W_hh^T, same gate order, zero pad lanes/rows
    # b_ref:    (1, 4*Hp)     b_ih + b_hh (pre-summed), zero pad lanes
    # wlin_ref: (T, 1, Hp)    Linear weight row t (zero pad lanes) multiplies h_t
    # blin_ref: (1, 1)
    # out_ref:  (Bp, 1)
    # xp_ref:   (T, Bp, 4*Hp) VMEM scratch for the hoisted input projection
    Hp = whh_ref.shape[0]
    T, Bp, _ = xp_ref.shape

    # ---- Hoisted input projection: ONE matmul for all timesteps (off the chain),
    #      single-shot store into the scratch. ----
    xp = jnp.dot(x_ref[...], wih_ref[...],
                 preferred_element_type=jnp.float32) + b_ref[...]       # (T*Bp, 4Hp)
    xp_ref[...] = xp.reshape(T, Bp, 4 * Hp)

    whh = whh_ref[...]  # (Hp, 4*Hp), loaded once outside the recurrence

    def step(t, carry):
        h, c, acc = carry
        # One fused MXU push per timestep on the serial chain.
        gates = xp_ref[t] + jnp.dot(h, whh, preferred_element_type=jnp.float32)

        # Gate order (i, f, o, g): single tanh-form sigmoid pass over the first
        # three aligned 128-lane blocks, one tanh over g. All slices start on
        # 128-lane tile boundaries -> free extraction, full-vreg EUP/VPU ops.
        sig = 0.5 * jnp.tanh(0.5 * gates[:, 0:3 * Hp]) + 0.5
        i_g = sig[:, 0 * Hp:1 * Hp]
        f_g = sig[:, 1 * Hp:2 * Hp]
        o_g = sig[:, 2 * Hp:3 * Hp]
        g_g = jnp.tanh(gates[:, 3 * Hp:4 * Hp])

        c = f_g * c + i_g * g_g
        h = o_g * jnp.tanh(c)

        # Final Linear accumulated elementwise on the VPU (no N=1 matmuls):
        #   y[b] = sum_t sum_j h_t[b, j] * w_lin[t*H + j]
        acc = acc + h * wlin_ref[t]        # (Bp, Hp) * (1, Hp); pad lanes are zero
        return h, c, acc

    h0 = jnp.zeros((Bp, Hp), jnp.float32)
    c0 = jnp.zeros((Bp, Hp), jnp.float32)
    acc0 = jnp.zeros((Bp, Hp), jnp.float32)
    _, _, acc = lax.fori_loop(0, T, step, (h0, c0, acc0), unroll=True)

    # Single lane-reduce (XLU) + bias at the very end. (Lane-dense output only
    # matters once batch scales; see TODO above.)
    out_ref[...] = jnp.sum(acc, axis=1, keepdims=True) + blin_ref[...]


def mv_lstm_forward(x, w_ih, w_hh, b_ih, b_hh, w_lin, b_lin):
    """x: (B, T, F) float32. Returns (B, 1) float32, matching MV_LSTM.forward
    with zero-initialized (h0, c0) from init_hidden."""
    B, T, F = x.shape
    H = w_hh.shape[1]
    Hp = H_PAD
    Fp = F_PAD
    B_pad = max(8, ((B + 7) // 8) * 8)   # pad batch to sublane width

    # Time-major, batch- and feature-padded, flattened input for the single
    # hoisted projection.
    x_tm = jnp.transpose(x, (1, 0, 2)).astype(jnp.float32)                # (T, B, F)
    x_tm = jnp.pad(x_tm, ((0, 0), (0, B_pad - B), (0, Fp - F)))           # (T, Bp, Fp)
    x_flat = x_tm.reshape(T * B_pad, Fp)                                  # (T*Bp, Fp)

    # Pre-transposed, gate-reordered, lane-padded weights. PyTorch row order is
    # (i, f, g, o); target column-block order is (i, f, o, g) with Hp lanes/gate
    # and zeroed pad lanes/rows.
    w_ih_f = w_ih.astype(jnp.float32)          # (4H, F)
    w_hh_f = w_hh.astype(jnp.float32)          # (4H, H)
    bias_f = (b_ih + b_hh).astype(jnp.float32)  # (4H,)

    gate_order = (0, 1, 3, 2)  # new block g <- old PyTorch gate gate_order[g]
    wih_t = jnp.zeros((Fp, 4 * Hp), jnp.float32)
    whh_t = jnp.zeros((Hp, 4 * Hp), jnp.float32)
    bias = jnp.zeros((1, 4 * Hp), jnp.float32)
    for new_g, old_g in enumerate(gate_order):
        rows = slice(old_g * H, (old_g + 1) * H)
        cols = slice(new_g * Hp, new_g * Hp + H)
        wih_t = wih_t.at[:F, cols].set(w_ih_f[rows, :].T)
        whh_t = whh_t.at[:H, cols].set(w_hh_f[rows, :].T)
        bias = bias.at[0, cols].set(bias_f[rows])

    wlin = jnp.zeros((T, 1, Hp), jnp.float32)
    wlin = wlin.at[:, 0, :H].set(w_lin.reshape(T, H).astype(jnp.float32))  # (T, 1, Hp)
    blin = b_lin.reshape(1, 1).astype(jnp.float32)                         # (1, 1)

    vmem = pl.BlockSpec(memory_space=pltpu.MemorySpace.VMEM)
    out = pl.pallas_call(
        mv_lstm_kernel,
        out_shape=jax.ShapeDtypeStruct((B_pad, 1), jnp.float32),
        in_specs=[vmem] * 6,
        out_specs=vmem,
        scratch_shapes=[pltpu.VMEM((T, B_pad, 4 * Hp), jnp.float32)],
    )(x_flat, wih_t, whh_t, bias, wlin, blin)
    return out[:B]


def _reference_forward(x, w_ih, w_hh, b_ih, b_hh, w_lin, b_lin):
    """Pure-JAX reference identical to torch.nn.LSTM + Linear semantics."""
    B, T, F = x.shape
    H = w_hh.shape[1]
    h = jnp.zeros((B, H), jnp.float32)
    c = jnp.zeros((B, H), jnp.float32)
    outs = []
    for t in range(T):
        gates = x[:, t, :] @ w_ih.T + h @ w_hh.T + b_ih + b_hh           # (B, 4H)
        i = jax.nn.sigmoid(gates[:, 0 * H:1 * H])
        f = jax.nn.sigmoid(gates[:, 1 * H:2 * H])
        g = jnp.tanh(gates[:, 2 * H:3 * H])
        o = jax.nn.sigmoid(gates[:, 3 * H:4 * H])
        c = f * c + i * g
        h = o * jnp.tanh(c)
        outs.append(h)
    flat = jnp.concatenate(outs, axis=1)                                  # (B, T*H)
    return flat @ w_lin.T + b_lin


if __name__ == "__main__":
    key = jax.random.PRNGKey(0)
    k = jax.random.split(key, 8)
    H, F, T, B = N_HIDDEN, N_FEATURES, SEQ_LEN, BATCH

    # Deterministic parameter init (PyTorch-style U(-1/sqrt(H), 1/sqrt(H))).
    bound = 1.0 / jnp.sqrt(jnp.float32(H))
    w_ih = jax.random.uniform(k[0], (4 * H, F), jnp.float32, -bound, bound)
    w_hh = jax.random.uniform(k[1], (4 * H, H), jnp.float32, -bound, bound)
    b_ih = jax.random.uniform(k[2], (4 * H,), jnp.float32, -bound, bound)
    b_hh = jax.random.uniform(k[3], (4 * H,), jnp.float32, -bound, bound)

    lin_bound = 1.0 / jnp.sqrt(jnp.float32(T * H))
    w_lin = jax.random.uniform(k[4], (1, T * H), jnp.float32, -lin_bound, lin_bound)
    b_lin = jax.random.uniform(k[5], (1,), jnp.float32, -lin_bound, lin_bound)

    x = jax.random.normal(k[6], (B, T, F), jnp.float32)

    y = mv_lstm_forward(x, w_ih, w_hh, b_ih, b_hh, w_lin, b_lin)
    y = jax.block_until_ready(y)

    y_ref = _reference_forward(x, w_ih, w_hh, b_ih, b_hh, w_lin, b_lin)
    assert y.shape == (B, 1)
    assert jnp.allclose(y, y_ref, atol=1e-4, rtol=1e-4), (y, y_ref)

    print("KERNEL_OK")
</pallas_src>

<mosaic_0001>
module attributes {stable_mosaic.version = 11 : i64} {
  func.func @mv_lstm_kernel(%arg0: memref<64x8xf32, #tpu.memory_space<vmem>>, %arg1: memref<8x512xf32, #tpu.memory_space<vmem>>, %arg2: memref<128x512xf32, #tpu.memory_space<vmem>>, %arg3: memref<1x512xf32, #tpu.memory_space<vmem>>, %arg4: memref<8x1x128xf32, #tpu.memory_space<vmem>>, %arg5: memref<1x1xf32, #tpu.memory_space<vmem>>, %arg6: memref<8x1xf32, #tpu.memory_space<vmem>>, %arg7: memref<8x8x512xf32, #tpu.memory_space<vmem>>) attributes {dimension_semantics = [], scalar_prefetch = 0 : i64, scratch_operands = 1 : i64, tpu.core_type = #tpu.core_type<tc>} {
    %c0 = arith.constant 0 : index
    %c0_0 = arith.constant 0 : index
    %0 = vector.load %arg0[%c0, %c0_0] : memref<64x8xf32, #tpu.memory_space<vmem>>, vector<64x8xf32>
    %c0_1 = arith.constant 0 : index
    %c0_2 = arith.constant 0 : index
    %1 = vector.load %arg1[%c0_1, %c0_2] : memref<8x512xf32, #tpu.memory_space<vmem>>, vector<8x512xf32>
    %cst = arith.constant dense<0.000000e+00> : vector<64x512xf32>
    %2 = tpu.matmul %0, %1, %cst {dimension_numbers = #tpu.dot_dimension_numbers<[1], [0], [0], [1], [0, 0, 1, 1], [], []>} : vector<64x8xf32>, vector<8x512xf32>, vector<64x512xf32> -> vector<64x512xf32>
    %c0_3 = arith.constant 0 : index
    %c0_4 = arith.constant 0 : index
    %3 = vector.load %arg3[%c0_3, %c0_4] : memref<1x512xf32, #tpu.memory_space<vmem>>, vector<1x512xf32>
    %4 = vector.broadcast %3 : vector<1x512xf32> to vector<64x512xf32>
    %5 = arith.addf %2, %4 : vector<64x512xf32>
    %6 = vector.shape_cast %5 : vector<64x512xf32> to vector<8x8x512xf32>
    %c0_5 = arith.constant 0 : index
    %c0_6 = arith.constant 0 : index
    %c0_7 = arith.constant 0 : index
    %7 = vector.load %arg7[%c0_5, %c0_6, %c0_7] : memref<8x8x512xf32, #tpu.memory_space<vmem>>, vector<8x8x512xf32>
    tpu.vector_store %arg7[%c0_5, %c0_6, %c0_7], %6 {strides = array<i32>} : memref<8x8x512xf32, #tpu.memory_space<vmem>>, vector<8x8x512xf32>,
    %c0_8 = arith.constant 0 : index
    %c0_9 = arith.constant 0 : index
    %8 = vector.load %arg2[%c0_8, %c0_9] : memref<128x512xf32, #tpu.memory_space<vmem>>, vector<128x512xf32>
    %cst_10 = arith.constant 0.000000e+00 : f32
    %9 = vector.broadcast %cst_10 : f32 to vector<8x128xf32>
    %cst_11 = arith.constant 0.000000e+00 : f32
    %10 = vector.broadcast %cst_11 : f32 to vector<8x128xf32>
    %cst_12 = arith.constant 0.000000e+00 : f32
    %11 = vector.broadcast %cst_12 : f32 to vector<8x128xf32>
    %c0_i32 = arith.constant 0 : i32
    %12 = arith.index_cast %c0_i32 : i32 to index
    %c0_13 = arith.constant 0 : index
    %c0_14 = arith.constant 0 : index
    %13 = vector.load %arg7[%12, %c0_13, %c0_14] : memref<8x8x512xf32, #tpu.memory_space<vmem>>, vector<1x8x512xf32>
    %14 = vector.shape_cast %13 : vector<1x8x512xf32> to vector<8x512xf32>
    %cst_15 = arith.constant dense<0.000000e+00> : vector<8x512xf32>
    %15 = tpu.matmul %9, %8, %cst_15 {dimension_numbers = #tpu.dot_dimension_numbers<[1], [0], [0], [1], [0, 0, 1, 1], [], []>} : vector<8x128xf32>, vector<128x512xf32>, vector<8x512xf32> -> vector<8x512xf32>
    %16 = arith.addf %14, %15 : vector<8x512xf32>
    %17 = vector.extract_strided_slice %16 {offsets = [0, 0], sizes = [8, 384], strides = [1, 1]} : vector<8x512xf32> to vector<8x384xf32>
    %cst_16 = arith.constant 5.000000e-01 : f32
    %18 = vector.broadcast %cst_16 : f32 to vector<8x384xf32>
    %19 = arith.mulf %18, %17 : vector<8x384xf32>
    %20 = math.tanh %19 : vector<8x384xf32>
    %cst_17 = arith.constant 5.000000e-01 : f32
    %21 = vector.broadcast %cst_17 : f32 to vector<8x384xf32>
    %22 = arith.mulf %21, %20 : vector<8x384xf32>
    %cst_18 = arith.constant 5.000000e-01 : f32
    %23 = vector.broadcast %cst_18 : f32 to vector<8x384xf32>
    %24 = arith.addf %22, %23 : vector<8x384xf32>
    %25 = vector.extract_strided_slice %24 {offsets = [0, 0], sizes = [8, 128], strides = [1, 1]} : vector<8x384xf32> to vector<8x128xf32>
    %26 = vector.extract_strided_slice %24 {offsets = [0, 128], sizes = [8, 128], strides = [1, 1]} : vector<8x384xf32> to vector<8x128xf32>
    %27 = vector.extract_strided_slice %24 {offsets = [0, 256], sizes = [8, 128], strides = [1, 1]} : vector<8x384xf32> to vector<8x128xf32>
    %28 = vector.extract_strided_slice %16 {offsets = [0, 384], sizes = [8, 128], strides = [1, 1]} : vector<8x512xf32> to vector<8x128xf32>
    %29 = math.tanh %28 : vector<8x128xf32>
    %30 = arith.mulf %26, %10 : vector<8x128xf32>
    %31 = arith.mulf %25, %29 : vector<8x128xf32>
    %32 = arith.addf %30, %31 : vector<8x128xf32>
    %33 = math.tanh %32 : vector<8x128xf32>
    %34 = arith.mulf %27, %33 : vector<8x128xf32>
    %35 = arith.index_cast %c0_i32 : i32 to index
    %c0_19 = arith.constant 0 : index
    %c0_20 = arith.constant 0 : index
    %36 = vector.load %arg4[%35, %c0_19, %c0_20] : memref<8x1x128xf32, #tpu.memory_space<vmem>>, vector<1x1x128xf32>
    %37 = vector.shape_cast %36 : vector<1x1x128xf32> to vector<1x128xf32>
    %38 = vector.broadcast %37 : vector<1x128xf32> to vector<8x128xf32>
    %39 = arith.mulf %34, %38 : vector<8x128xf32>
    %40 = arith.addf %11, %39 : vector<8x128xf32>
    %c1_i32 = arith.constant 1 : i32
    %41 = arith.index_cast %c1_i32 : i32 to index
    %c0_21 = arith.constant 0 : index
    %c0_22 = arith.constant 0 : index
    %42 = vector.load %arg7[%41, %c0_21, %c0_22] : memref<8x8x512xf32, #tpu.memory_space<vmem>>, vector<1x8x512xf32>
    %43 = vector.shape_cast %42 : vector<1x8x512xf32> to vector<8x512xf32>
    %cst_23 = arith.constant dense<0.000000e+00> : vector<8x512xf32>
    %44 = tpu.matmul %34, %8, %cst_23 {dimension_numbers = #tpu.dot_dimension_numbers<[1], [0], [0], [1], [0, 0, 1, 1], [], []>} : vector<8x128xf32>, vector<128x512xf32>, vector<8x512xf32> -> vector<8x512xf32>
    %45 = arith.addf %43, %44 : vector<8x512xf32>
    %46 = vector.extract_strided_slice %45 {offsets = [0, 0], sizes = [8, 384], strides = [1, 1]} : vector<8x512xf32> to vector<8x384xf32>
    %cst_24 = arith.constant 5.000000e-01 : f32
    %47 = vector.broadcast %cst_24 : f32 to vector<8x384xf32>
    %48 = arith.mulf %47, %46 : vector<8x384xf32>
    %49 = math.tanh %48 : vector<8x384xf32>
    %cst_25 = arith.constant 5.000000e-01 : f32
    %50 = vector.broadcast %cst_25 : f32 to vector<8x384xf32>
    %51 = arith.mulf %50, %49 : vector<8x384xf32>
    %cst_26 = arith.constant 5.000000e-01 : f32
    %52 = vector.broadcast %cst_26 : f32 to vector<8x384xf32>
    %53 = arith.addf %51, %52 : vector<8x384xf32>
    %54 = vector.extract_strided_slice %53 {offsets = [0, 0], sizes = [8, 128], strides = [1, 1]} : vector<8x384xf32> to vector<8x128xf32>
    %55 = vector.extract_strided_slice %53 {offsets = [0, 128], sizes = [8, 128], strides = [1, 1]} : vector<8x384xf32> to vector<8x128xf32>
    %56 = vector.extract_strided_slice %53 {offsets = [0, 256], sizes = [8, 128], strides = [1, 1]} : vector<8x384xf32> to vector<8x128xf32>
    %57 = vector.extract_strided_slice %45 {offsets = [0, 384], sizes = [8, 128], strides = [1, 1]} : vector<8x512xf32> to vector<8x128xf32>
    %58 = math.tanh %57 : vector<8x128xf32>
    %59 = arith.mulf %55, %32 : vector<8x128xf32>
    %60 = arith.mulf %54, %58 : vector<8x128xf32>
    %61 = arith.addf %59, %60 : vector<8x128xf32>
    %62 = math.tanh %61 : vector<8x128xf32>
    %63 = arith.mulf %56, %62 : vector<8x128xf32>
    %64 = arith.index_cast %c1_i32 : i32 to index
    %c0_27 = arith.constant 0 : index
    %c0_28 = arith.constant 0 : index
    %65 = vector.load %arg4[%64, %c0_27, %c0_28] : memref<8x1x128xf32, #tpu.memory_space<vmem>>, vector<1x1x128xf32>
    %66 = vector.shape_cast %65 : vector<1x1x128xf32> to vector<1x128xf32>
    %67 = vector.broadcast %66 : vector<1x128xf32> to vector<8x128xf32>
    %68 = arith.mulf %63, %67 : vector<8x128xf32>
    %69 = arith.addf %40, %68 : vector<8x128xf32>
    %c2_i32 = arith.constant 2 : i32
    %70 = arith.index_cast %c2_i32 : i32 to index
    %c0_29 = arith.constant 0 : index
    %c0_30 = arith.constant 0 : index
    %71 = vector.load %arg7[%70, %c0_29, %c0_30] : memref<8x8x512xf32, #tpu.memory_space<vmem>>, vector<1x8x512xf32>
    %72 = vector.shape_cast %71 : vector<1x8x512xf32> to vector<8x512xf32>
    %cst_31 = arith.constant dense<0.000000e+00> : vector<8x512xf32>
    %73 = tpu.matmul %63, %8, %cst_31 {dimension_numbers = #tpu.dot_dimension_numbers<[1], [0], [0], [1], [0, 0, 1, 1], [], []>} : vector<8x128xf32>, vector<128x512xf32>, vector<8x512xf32> -> vector<8x512xf32>
    %74 = arith.addf %72, %73 : vector<8x512xf32>
    %75 = vector.extract_strided_slice %74 {offsets = [0, 0], sizes = [8, 384], strides = [1, 1]} : vector<8x512xf32> to vector<8x384xf32>
    %cst_32 = arith.constant 5.000000e-01 : f32
    %76 = vector.broadcast %cst_32 : f32 to vector<8x384xf32>
    %77 = arith.mulf %76, %75 : vector<8x384xf32>
    %78 = math.tanh %77 : vector<8x384xf32>
    %cst_33 = arith.constant 5.000000e-01 : f32
    %79 = vector.broadcast %cst_33 : f32 to vector<8x384xf32>
    %80 = arith.mulf %79, %78 : vector<8x384xf32>
    %cst_34 = arith.constant 5.000000e-01 : f32
    %81 = vector.broadcast %cst_34 : f32 to vector<8x384xf32>
    %82 = arith.addf %80, %81 : vector<8x384xf32>
    %83 = vector.extract_strided_slice %82 {offsets = [0, 0], sizes = [8, 128], strides = [1, 1]} : vector<8x384xf32> to vector<8x128xf32>
    %84 = vector.extract_strided_slice %82 {offsets = [0, 128], sizes = [8, 128], strides = [1, 1]} : vector<8x384xf32> to vector<8x128xf32>
    %85 = vector.extract_strided_slice %82 {offsets = [0, 256], sizes = [8, 128], strides = [1, 1]} : vector<8x384xf32> to vector<8x128xf32>
    %86 = vector.extract_strided_slice %74 {offsets = [0, 384], sizes = [8, 128], strides = [1, 1]} : vector<8x512xf32> to vector<8x128xf32>
    %87 = math.tanh %86 : vector<8x128xf32>
    %88 = arith.mulf %84, %61 : vector<8x128xf32>
    %89 = arith.mulf %83, %87 : vector<8x128xf32>
    %90 = arith.addf %88, %89 : vector<8x128xf32>
    %91 = math.tanh %90 : vector<8x128xf32>
    %92 = arith.mulf %85, %91 : vector<8x128xf32>
    %93 = arith.index_cast %c2_i32 : i32 to index
    %c0_35 = arith.constant 0 : index
    %c0_36 = arith.constant 0 : index
    %94 = vector.load %arg4[%93, %c0_35, %c0_36] : memref<8x1x128xf32, #tpu.memory_space<vmem>>, vector<1x1x128xf32>
    %95 = vector.shape_cast %94 : vector<1x1x128xf32> to vector<1x128xf32>
    %96 = vector.broadcast %95 : vector<1x128xf32> to vector<8x128xf32>
    %97 = arith.mulf %92, %96 : vector<8x128xf32>
    %98 = arith.addf %69, %97 : vector<8x128xf32>
    %c3_i32 = arith.constant 3 : i32
    %99 = arith.index_cast %c3_i32 : i32 to index
    %c0_37 = arith.constant 0 : index
    %c0_38 = arith.constant 0 : index
    %100 = vector.load %arg7[%99, %c0_37, %c0_38] : memref<8x8x512xf32, #tpu.memory_space<vmem>>, vector<1x8x512xf32>
    %101 = vector.shape_cast %100 : vector<1x8x512xf32> to vector<8x512xf32>
    %cst_39 = arith.constant dense<0.000000e+00> : vector<8x512xf32>
    %102 = tpu.matmul %92, %8, %cst_39 {dimension_numbers = #tpu.dot_dimension_numbers<[1], [0], [0], [1], [0, 0, 1, 1], [], []>} : vector<8x128xf32>, vector<128x512xf32>, vector<8x512xf32> -> vector<8x512xf32>
    %103 = arith.addf %101, %102 : vector<8x512xf32>
    %104 = vector.extract_strided_slice %103 {offsets = [0, 0], sizes = [8, 384], strides = [1, 1]} : vector<8x512xf32> to vector<8x384xf32>
    %cst_40 = arith.constant 5.000000e-01 : f32
    %105 = vector.broadcast %cst_40 : f32 to vector<8x384xf32>
    %106 = arith.mulf %105, %104 : vector<8x384xf32>
    %107 = math.tanh %106 : vector<8x384xf32>
    %cst_41 = arith.constant 5.000000e-01 : f32
    %108 = vector.broadcast %cst_41 : f32 to vector<8x384xf32>
    %109 = arith.mulf %108, %107 : vector<8x384xf32>
    %cst_42 = arith.constant 5.000000e-01 : f32
    %110 = vector.broadcast %cst_42 : f32 to vector<8x384xf32>
    %111 = arith.addf %109, %110 : vector<8x384xf32>
    %112 = vector.extract_strided_slice %111 {offsets = [0, 0], sizes = [8, 128], strides = [1, 1]} : vector<8x384xf32> to vector<8x128xf32>
    %113 = vector.extract_strided_slice %111 {offsets = [0, 128], sizes = [8, 128], strides = [1, 1]} : vector<8x384xf32> to vector<8x128xf32>
    %114 = vector.extract_strided_slice %111 {offsets = [0, 256], sizes = [8, 128], strides = [1, 1]} : vector<8x384xf32> to vector<8x128xf32>
    %115 = vector.extract_strided_slice %103 {offsets = [0, 384], sizes = [8, 128], strides = [1, 1]} : vector<8x512xf32> to vector<8x128xf32>
    %116 = math.tanh %115 : vector<8x128xf32>
    %117 = arith.mulf %113, %90 : vector<8x128xf32>
    %118 = arith.mulf %112, %116 : vector<8x128xf32>
    %119 = arith.addf %117, %118 : vector<8x128xf32>
    %120 = math.tanh %119 : vector<8x128xf32>
    %121 = arith.mulf %114, %120 : vector<8x128xf32>
    %122 = arith.index_cast %c3_i32 : i32 to index
    %c0_43 = arith.constant 0 : index
    %c0_44 = arith.constant 0 : index
    %123 = vector.load %arg4[%122, %c0_43, %c0_44] : memref<8x1x128xf32, #tpu.memory_space<vmem>>, vector<1x1x128xf32>
    %124 = vector.shape_cast %123 : vector<1x1x128xf32> to vector<1x128xf32>
    %125 = vector.broadcast %124 : vector<1x128xf32> to vector<8x128xf32>
    %126 = arith.mulf %121, %125 : vector<8x128xf32>
    %127 = arith.addf %98, %126 : vector<8x128xf32>
    %c4_i32 = arith.constant 4 : i32
    %128 = arith.index_cast %c4_i32 : i32 to index
    %c0_45 = arith.constant 0 : index
    %c0_46 = arith.constant 0 : index
    %129 = vector.load %arg7[%128, %c0_45, %c0_46] : memref<8x8x512xf32, #tpu.memory_space<vmem>>, vector<1x8x512xf32>
    %130 = vector.shape_cast %129 : vector<1x8x512xf32> to vector<8x512xf32>
    %cst_47 = arith.constant dense<0.000000e+00> : vector<8x512xf32>
    %131 = tpu.matmul %121, %8, %cst_47 {dimension_numbers = #tpu.dot_dimension_numbers<[1], [0], [0], [1], [0, 0, 1, 1], [], []>} : vector<8x128xf32>, vector<128x512xf32>, vector<8x512xf32> -> vector<8x512xf32>
    %132 = arith.addf %130, %131 : vector<8x512xf32>
    %133 = vector.extract_strided_slice %132 {offsets = [0, 0], sizes = [8, 384], strides = [1, 1]} : vector<8x512xf32> to vector<8x384xf32>
    %cst_48 = arith.constant 5.000000e-01 : f32
    %134 = vector.broadcast %cst_48 : f32 to vector<8x384xf32>
    %135 = arith.mulf %134, %133 : vector<8x384xf32>
    %136 = math.tanh %135 : vector<8x384xf32>
    %cst_49 = arith.constant 5.000000e-01 : f32
    %137 = vector.broadcast %cst_49 : f32 to vector<8x384xf32>
    %138 = arith.mulf %137, %136 : vector<8x384xf32>
    %cst_50 = arith.constant 5.000000e-01 : f32
    %139 = vector.broadcast %cst_50 : f32 to vector<8x384xf32>
    %140 = arith.addf %138, %139 : vector<8x384xf32>
    %141 = vector.extract_strided_slice %140 {offsets = [0, 0], sizes = [8, 128], strides = [1, 1]} : vector<8x384xf32> to vector<8x128xf32>
    %142 = vector.extract_strided_slice %140 {offsets = [0, 128], sizes = [8, 128], strides = [1, 1]} : vector<8x384xf32> to vector<8x128xf32>
    %143 = vector.extract_strided_slice %140 {offsets = [0, 256], sizes = [8, 128], strides = [1, 1]} : vector<8x384xf32> to vector<8x128xf32>
    %144 = vector.extract_strided_slice %132 {offsets = [0, 384], sizes = [8, 128], strides = [1, 1]} : vector<8x512xf32> to vector<8x128xf32>
    %145 = math.tanh %144 : vector<8x128xf32>
    %146 = arith.mulf %142, %119 : vector<8x128xf32>
    %147 = arith.mulf %141, %145 : vector<8x128xf32>
    %148 = arith.addf %146, %147 : vector<8x128xf32>
    %149 = math.tanh %148 : vector<8x128xf32>
    %150 = arith.mulf %143, %149 : vector<8x128xf32>
    %151 = arith.index_cast %c4_i32 : i32 to index
    %c0_51 = arith.constant 0 : index
    %c0_52 = arith.constant 0 : index
    %152 = vector.load %arg4[%151, %c0_51, %c0_52] : memref<8x1x128xf32, #tpu.memory_space<vmem>>, vector<1x1x128xf32>
    %153 = vector.shape_cast %152 : vector<1x1x128xf32> to vector<1x128xf32>
    %154 = vector.broadcast %153 : vector<1x128xf32> to vector<8x128xf32>
    %155 = arith.mulf %150, %154 : vector<8x128xf32>
    %156 = arith.addf %127, %155 : vector<8x128xf32>
    %c5_i32 = arith.constant 5 : i32
    %157 = arith.index_cast %c5_i32 : i32 to index
    %c0_53 = arith.constant 0 : index
    %c0_54 = arith.constant 0 : index
    %158 = vector.load %arg7[%157, %c0_53, %c0_54] : memref<8x8x512xf32, #tpu.memory_space<vmem>>, vector<1x8x512xf32>
    %159 = vector.shape_cast %158 : vector<1x8x512xf32> to vector<8x512xf32>
    %cst_55 = arith.constant dense<0.000000e+00> : vector<8x512xf32>
    %160 = tpu.matmul %150, %8, %cst_55 {dimension_numbers = #tpu.dot_dimension_numbers<[1], [0], [0], [1], [0, 0, 1, 1], [], []>} : vector<8x128xf32>, vector<128x512xf32>, vector<8x512xf32> -> vector<8x512xf32>
    %161 = arith.addf %159, %160 : vector<8x512xf32>
    %162 = vector.extract_strided_slice %161 {offsets = [0, 0], sizes = [8, 384], strides = [1, 1]} : vector<8x512xf32> to vector<8x384xf32>
    %cst_56 = arith.constant 5.000000e-01 : f32
    %163 = vector.broadcast %cst_56 : f32 to vector<8x384xf32>
    %164 = arith.mulf %163, %162 : vector<8x384xf32>
    %165 = math.tanh %164 : vector<8x384xf32>
    %cst_57 = arith.constant 5.000000e-01 : f32
    %166 = vector.broadcast %cst_57 : f32 to vector<8x384xf32>
    %167 = arith.mulf %166, %165 : vector<8x384xf32>
    %cst_58 = arith.constant 5.000000e-01 : f32
    %168 = vector.broadcast %cst_58 : f32 to vector<8x384xf32>
    %169 = arith.addf %167, %168 : vector<8x384xf32>
    %170 = vector.extract_strided_slice %169 {offsets = [0, 0], sizes = [8, 128], strides = [1, 1]} : vector<8x384xf32> to vector<8x128xf32>
    %171 = vector.extract_strided_slice %169 {offsets = [0, 128], sizes = [8, 128], strides = [1, 1]} : vector<8x384xf32> to vector<8x128xf32>
    %172 = vector.extract_strided_slice %169 {offsets = [0, 256], sizes = [8, 128], strides = [1, 1]} : vector<8x384xf32> to vector<8x128xf32>
    %173 = vector.extract_strided_slice %161 {offsets = [0, 384], sizes = [8, 128], strides = [1, 1]} : vector<8x512xf32> to vector<8x128xf32>
    %174 = math.tanh %173 : vector<8x128xf32>
    %175 = arith.mulf %171, %148 : vector<8x128xf32>
    %176 = arith.mulf %170, %174 : vector<8x128xf32>
    %177 = arith.addf %175, %176 : vector<8x128xf32>
    %178 = math.tanh %177 : vector<8x128xf32>
    %179 = arith.mulf %172, %178 : vector<8x128xf32>
    %180 = arith.index_cast %c5_i32 : i32 to index
    %c0_59 = arith.constant 0 : index
    %c0_60 = arith.constant 0 : index
    %181 = vector.load %arg4[%180, %c0_59, %c0_60] : memref<8x1x128xf32, #tpu.memory_space<vmem>>, vector<1x1x128xf32>
    %182 = vector.shape_cast %181 : vector<1x1x128xf32> to vector<1x128xf32>
    %183 = vector.broadcast %182 : vector<1x128xf32> to vector<8x128xf32>
    %184 = arith.mulf %179, %183 : vector<8x128xf32>
    %185 = arith.addf %156, %184 : vector<8x128xf32>
    %c6_i32 = arith.constant 6 : i32
    %186 = arith.index_cast %c6_i32 : i32 to index
    %c0_61 = arith.constant 0 : index
    %c0_62 = arith.constant 0 : index
    %187 = vector.load %arg7[%186, %c0_61, %c0_62] : memref<8x8x512xf32, #tpu.memory_space<vmem>>, vector<1x8x512xf32>
    %188 = vector.shape_cast %187 : vector<1x8x512xf32> to vector<8x512xf32>
    %cst_63 = arith.constant dense<0.000000e+00> : vector<8x512xf32>
    %189 = tpu.matmul %179, %8, %cst_63 {dimension_numbers = #tpu.dot_dimension_numbers<[1], [0], [0], [1], [0, 0, 1, 1], [], []>} : vector<8x128xf32>, vector<128x512xf32>, vector<8x512xf32> -> vector<8x512xf32>
    %190 = arith.addf %188, %189 : vector<8x512xf32>
    %191 = vector.extract_strided_slice %190 {offsets = [0, 0], sizes = [8, 384], strides = [1, 1]} : vector<8x512xf32> to vector<8x384xf32>
    %cst_64 = arith.constant 5.000000e-01 : f32
    %192 = vector.broadcast %cst_64 : f32 to vector<8x384xf32>
    %193 = arith.mulf %192, %191 : vector<8x384xf32>
    %194 = math.tanh %193 : vector<8x384xf32>
    %cst_65 = arith.constant 5.000000e-01 : f32
    %195 = vector.broadcast %cst_65 : f32 to vector<8x384xf32>
    %196 = arith.mulf %195, %194 : vector<8x384xf32>
    %cst_66 = arith.constant 5.000000e-01 : f32
    %197 = vector.broadcast %cst_66 : f32 to vector<8x384xf32>
    %198 = arith.addf %196, %197 : vector<8x384xf32>
    %199 = vector.extract_strided_slice %198 {offsets = [0, 0], sizes = [8, 128], strides = [1, 1]} : vector<8x384xf32> to vector<8x128xf32>
    %200 = vector.extract_strided_slice %198 {offsets = [0, 128], sizes = [8, 128], strides = [1, 1]} : vector<8x384xf32> to vector<8x128xf32>
    %201 = vector.extract_strided_slice %198 {offsets = [0, 256], sizes = [8, 128], strides = [1, 1]} : vector<8x384xf32> to vector<8x128xf32>
    %202 = vector.extract_strided_slice %190 {offsets = [0, 384], sizes = [8, 128], strides = [1, 1]} : vector<8x512xf32> to vector<8x128xf32>
    %203 = math.tanh %202 : vector<8x128xf32>
    %204 = arith.mulf %200, %177 : vector<8x128xf32>
    %205 = arith.mulf %199, %203 : vector<8x128xf32>
    %206 = arith.addf %204, %205 : vector<8x128xf32>
    %207 = math.tanh %206 : vector<8x128xf32>
    %208 = arith.mulf %201, %207 : vector<8x128xf32>
    %209 = arith.index_cast %c6_i32 : i32 to index
    %c0_67 = arith.constant 0 : index
    %c0_68 = arith.constant 0 : index
    %210 = vector.load %arg4[%209, %c0_67, %c0_68] : memref<8x1x128xf32, #tpu.memory_space<vmem>>, vector<1x1x128xf32>
    %211 = vector.shape_cast %210 : vector<1x1x128xf32> to vector<1x128xf32>
    %212 = vector.broadcast %211 : vector<1x128xf32> to vector<8x128xf32>
    %213 = arith.mulf %208, %212 : vector<8x128xf32>
    %214 = arith.addf %185, %213 : vector<8x128xf32>
    %c7_i32 = arith.constant 7 : i32
    %215 = arith.index_cast %c7_i32 : i32 to index
    %c0_69 = arith.constant 0 : index
    %c0_70 = arith.constant 0 : index
    %216 = vector.load %arg7[%215, %c0_69, %c0_70] : memref<8x8x512xf32, #tpu.memory_space<vmem>>, vector<1x8x512xf32>
    %217 = vector.shape_cast %216 : vector<1x8x512xf32> to vector<8x512xf32>
    %cst_71 = arith.constant dense<0.000000e+00> : vector<8x512xf32>
    %218 = tpu.matmul %208, %8, %cst_71 {dimension_numbers = #tpu.dot_dimension_numbers<[1], [0], [0], [1], [0, 0, 1, 1], [], []>} : vector<8x128xf32>, vector<128x512xf32>, vector<8x512xf32> -> vector<8x512xf32>
    %219 = arith.addf %217, %218 : vector<8x512xf32>
    %220 = vector.extract_strided_slice %219 {offsets = [0, 0], sizes = [8, 384], strides = [1, 1]} : vector<8x512xf32> to vector<8x384xf32>
    %cst_72 = arith.constant 5.000000e-01 : f32
    %221 = vector.broadcast %cst_72 : f32 to vector<8x384xf32>
    %222 = arith.mulf %221, %220 : vector<8x384xf32>
    %223 = math.tanh %222 : vector<8x384xf32>
    %cst_73 = arith.constant 5.000000e-01 : f32
    %224 = vector.broadcast %cst_73 : f32 to vector<8x384xf32>
    %225 = arith.mulf %224, %223 : vector<8x384xf32>
    %cst_74 = arith.constant 5.000000e-01 : f32
    %226 = vector.broadcast %cst_74 : f32 to vector<8x384xf32>
    %227 = arith.addf %225, %226 : vector<8x384xf32>
    %228 = vector.extract_strided_slice %227 {offsets = [0, 0], sizes = [8, 128], strides = [1, 1]} : vector<8x384xf32> to vector<8x128xf32>
    %229 = vector.extract_strided_slice %227 {offsets = [0, 128], sizes = [8, 128], strides = [1, 1]} : vector<8x384xf32> to vector<8x128xf32>
    %230 = vector.extract_strided_slice %227 {offsets = [0, 256], sizes = [8, 128], strides = [1, 1]} : vector<8x384xf32> to vector<8x128xf32>
    %231 = vector.extract_strided_slice %219 {offsets = [0, 384], sizes = [8, 128], strides = [1, 1]} : vector<8x512xf32> to vector<8x128xf32>
    %232 = math.tanh %231 : vector<8x128xf32>
    %233 = arith.mulf %229, %206 : vector<8x128xf32>
    %234 = arith.mulf %228, %232 : vector<8x128xf32>
    %235 = arith.addf %233, %234 : vector<8x128xf32>
    %236 = math.tanh %235 : vector<8x128xf32>
    %237 = arith.mulf %230, %236 : vector<8x128xf32>
    %238 = arith.index_cast %c7_i32 : i32 to index
    %c0_75 = arith.constant 0 : index
    %c0_76 = arith.constant 0 : index
    %239 = vector.load %arg4[%238, %c0_75, %c0_76] : memref<8x1x128xf32, #tpu.memory_space<vmem>>, vector<1x1x128xf32>
    %240 = vector.shape_cast %239 : vector<1x1x128xf32> to vector<1x128xf32>
    %241 = vector.broadcast %240 : vector<1x128xf32> to vector<8x128xf32>
    %242 = arith.mulf %237, %241 : vector<8x128xf32>
    %243 = arith.addf %214, %242 : vector<8x128xf32>
    %c8_i32 = arith.constant 8 : i32
    %cst_77 = arith.constant dense<0.000000e+00> : vector<8xf32>
    %244 = vector.multi_reduction <add>, %243, %cst_77 [1] : vector<8x128xf32> to vector<8xf32>
    %245 = vector.shape_cast %244 : vector<8xf32> to vector<8x1xf32>
    %c0_78 = arith.constant 0 : index
    %c0_79 = arith.constant 0 : index
    %246 = vector.load %arg5[%c0_78, %c0_79] : memref<1x1xf32, #tpu.memory_space<vmem>>, vector<1x1xf32>
    %247 = vector.broadcast %246 : vector<1x1xf32> to vector<8x1xf32>
    %248 = arith.addf %245, %247 : vector<8x1xf32>
    %c0_80 = arith.constant 0 : index
    %c0_81 = arith.constant 0 : index
    %249 = vector.load %arg6[%c0_80, %c0_81] : memref<8x1xf32, #tpu.memory_space<vmem>>, vector<8x1xf32>
    tpu.vector_store %arg6[%c0_80, %c0_81], %248 {strides = array<i32>} : memref<8x1xf32, #tpu.memory_space<vmem>>, vector<8x1xf32>,
    return
  }
}

</mosaic_0001>

<bundles_post_ra>
// kernel: tpu_custom_call.1
= control target key start
LH: loop header
LB: loop body
LE: loop exit
PB: predicated region body
PF: predicated region fallthrough
CT: control target
= control target key end

     0   :  { %s3158_s0 = inlined_call_operand.vmem [shape: f32[64,8], index: 0, kind: input, shape index: {}]   ;;  %s3159_s1 = inlined_call_operand.vmem [shape: f32[8,512], index: 1, kind: input, shape index: {}]   ;;  %s3160_s2 = inlined_call_operand.hbm [shape: f32[128,512], index: 2, kind: input, shape index: {}]   ;;  %s3161_s3 = inlined_call_operand.vmem [shape: f32[1,512], index: 3, kind: input, shape index: {}]   ;;  %s3162_s4 = inlined_call_operand.vmem [shape: f32[8,1,128], index: 4, kind: input, shape index: {}]   ;;  %s3163_s5 = inlined_call_operand.<no memory space> [shape: f32[1,1], index: 5, kind: input, shape index: {}]   ;;  %s3164_s6 = inlined_call_operand.vmem [shape: f32[8,1], index: 6, kind: output, shape index: {}]  }
   0x1   :  { %v11_v0 = vstv %s3163_s5 }
   0x2   :  { %12 = vst [vmem:[#allocation3] sm:$0x1] %v11_v0 }
   0x3   :  { %13 = vsyncpa [#allocation5], 0  ;;  %s2069_s23 = smov [#allocation4]  }
   0x4   :  { %s23_s24 = sshll.u32 %s2069_s23, 4  ;;  %s24_s24 = int_to_ptr.vmem [resolvable:$true] %s23_s24 }
   0x5   :  { %s2055_s25 = scalar_lea.vmem %s24_s24, 8192  ;;  %p2060_p1 = scmp.lt.s32.totalorder %s24_s24, %s24_s24 }
   0x6   :  { %p2056_p0 = scmp.ne.s32.totalorder %s24_s24, %s2055_s25  ;;  %p2061_p2 = scmp.lt.s32.totalorder %s2055_s25, %s2055_s25 }
   0x8   :  { %p2062_p3 = por %p2061_p2, %p2060_p1 }
   0xa   :  { %p2063_p4 = pnand %p2062_p3, %p2056_p0 }
   0xc   :  { %2066 = shalt.err (!%p2063_p4)
}
   0xd   :  { %s2070_s26 = smov 512   ;;  %s2071_s27 = smov 32  }
   0xe   :  { %29 = dma.hbm_to_vmem [thread:$0]  %s3160_s2, 8192, %s24_s24, [#allocation5], %s2070_s26, %s2070_s26, %s2071_s27  }
   0xf   :  { %2067 = dma.done.wait [#allocation5], 8192  }
  0x10   :  { %2068 = vsyncadd [#allocation5], 4294959104  ;;  %v3165_v1 = vmov 0.0   ;;  %v48_v2 = vld [vmem:[%s3159_s1 + $0x8] sm:$0xff]  ;;  %v50_v3 = vld [vmem:[%s3159_s1 + $0x18] sm:$0xff]  ;;  %vm73_vm0 = vcmask 64512  }
  0x11   :  { %162 = vmatprep.mubr.f32.mxu0 %v3165_v1  ;;  %275 = vmatprep.mubr.f32.mxu1 %v3165_v1  ;;  %v47_v4 = vld [vmem:[%s3159_s1] sm:$0xff]  ;;  %v49_v5 = vld [vmem:[%s3159_s1 + $0x10] sm:$0xff]  ;;  %v40_v15 = vld [vmem:[%s3158_s0 + $0x8] sm:$0xff]  ;;  %vm1860_vm1 = vcmask 7168  }
  0x12   :  { %128 = vmatprep.subr.mxu0 %v48_v2  ;;  %241 = vmatprep.subr.mxu1 %v50_v3  ;;  %v39_v6 = vld [vmem:[%s3158_s0] sm:$0xff]  ;;  %v2131_v7 = vld [vmem:[#allocation4 + $0x1e8] sm:$0xff]  ;;  %v2137_v10 = vld [vmem:[#allocation4 + $0x1f0] sm:$0xff] }
  0x13   :  { %3263 = vst [vmem:[#allocation7_spill] sm:$0xff] %v2131_v7  ;;  %129 = vmatpush1.msra.mxu0 %v47_v4  ;;  %242 = vmatpush1.msra.mxu1 %v49_v5  ;;  %v2133_v8 = vld [vmem:[#allocation4 + $0x1f8] sm:$0xff]  ;;  %v2135_v9 = vld [vmem:[#allocation4 + $0x1e0] sm:$0xff]  ;;  %v2141_v11 = vld [vmem:[#allocation4 + $0x1c8] sm:$0xff] }
  0x14   :  { %3264 = vst [vmem:[#allocation8_spill] sm:$0xff] %v2133_v8  ;;  %1867 = vmatmul.mubr.msk.f32.vlgmr.msra.gmra.mxu0 %vm73_vm0, %v39_v6  ;;  %1875 = vmatmul.mubr.msk.f32.vlgmr.msra.gmra.mxu1 %vm73_vm0, %v39_v6  ;;  %v2143_v12 = vld [vmem:[#allocation4 + $0x1d8] sm:$0xff]  ;;  %v2149_v13 = vld [vmem:[#allocation4 + $0x1c0] sm:$0xff]  ;;  %v2151_v14 = vld [vmem:[#allocation4 + $0x1d0] sm:$0xff] }
  0x15   :  { %424 = vmatprep.subr.mxu0 %v2131_v7  ;;  %495 = vmatprep.subr.mxu1 %v2133_v8  ;;  %v2160_v16 = vld [vmem:[#allocation4 + $0x1a8] sm:$0xff]  ;;  %v2162_v17 = vld [vmem:[#allocation4 + $0x1b8] sm:$0xff]  ;;  %v2166_v18 = vld [vmem:[#allocation4 + $0x1a0] sm:$0xff] }
  0x16   :  { %425 = vmatpush1.msra.mxu0 %v2135_v9  ;;  %496 = vmatpush1.msra.mxu1 %v2137_v10  ;;  %v2168_v19 = vld [vmem:[#allocation4 + $0x1b0] sm:$0xff]  ;;  %v2172_v20 = vld [vmem:[#allocation4 + $0x188] sm:$0xff]  ;;  %v2174_v21 = vld [vmem:[#allocation4 + $0x198] sm:$0xff] }
  0x17   :  { %426 = vmatprep.subr.mxu0 %v2141_v11  ;;  %497 = vmatprep.subr.mxu1 %v2143_v12  ;;  %v2180_v22 = vld [vmem:[#allocation4 + $0x180] sm:$0xff]  ;;  %v2182_v23 = vld [vmem:[#allocation4 + $0x190] sm:$0xff]  ;;  %v2191_v25 = vld [vmem:[#allocation4 + $0x168] sm:$0xff] }
  0x18   :  { %168 = vmatprep.mubr.f32.mxu0 %v3165_v1  ;;  %281 = vmatprep.mubr.f32.mxu1 %v3165_v1  ;;  %v41_v24 = vld [vmem:[%s3158_s0 + $0x10] sm:$0xff]  ;;  %v2193_v26 = vld [vmem:[#allocation4 + $0x178] sm:$0xff]  ;;  %v2197_v27 = vld [vmem:[#allocation4 + $0x160] sm:$0xff] }
  0x19   :  { %427 = vmatpush1.msra.mxu0 %v2149_v13  ;;  %498 = vmatpush1.msra.mxu1 %v2151_v14  ;;  %v2199_v28 = vld [vmem:[#allocation4 + $0x170] sm:$0xff]  ;;  %v2203_v29 = vld [vmem:[#allocation4 + $0x148] sm:$0xff]  ;;  %v2205_v30 = vld [vmem:[#allocation4 + $0x158] sm:$0xff] }
  0x1a   :  { %1868 = vmatmul.mubr.msk.f32.gmra.mxu0 %vm73_vm0, %v40_v15  ;;  %1876 = vmatmul.mubr.msk.f32.gmra.mxu1 %vm73_vm0, %v40_v15  ;;  %v2211_v31 = vld [vmem:[#allocation4 + $0x140] sm:$0xff]  ;;  %v2213_v32 = vld [vmem:[#allocation4 + $0x150] sm:$0xff]  ;;  %v2222_v34 = vld [vmem:[#allocation4 + $0x128] sm:$0xff] }
  0x1b   :  { %428 = vmatprep.subr.mxu0 %v2160_v16  ;;  %499 = vmatprep.subr.mxu1 %v2162_v17  ;;  %v42_v33 = vld [vmem:[%s3158_s0 + $0x18] sm:$0xff]  ;;  %v2228_v36 = vld [vmem:[#allocation4 + $0x120] sm:$0xff]  ;;  %v2234_v38 = vld [vmem:[#allocation4 + $0x108] sm:$0xff] }
  0x1c   :  { %429 = vmatpush1.msra.mxu0 %v2166_v18  ;;  %500 = vmatpush1.msra.mxu1 %v2168_v19  ;;  %v2224_v35 = vld [vmem:[#allocation4 + $0x138] sm:$0xff]  ;;  %v2230_v37 = vld [vmem:[#allocation4 + $0x130] sm:$0xff]  ;;  %v2242_v40 = vld [vmem:[#allocation4 + $0x100] sm:$0xff] }
  0x1d   :  { %430 = vmatprep.subr.mxu0 %v2172_v20  ;;  %501 = vmatprep.subr.mxu1 %v2174_v21  ;;  %v2236_v39 = vld [vmem:[#allocation4 + $0x118] sm:$0xff]  ;;  %v2244_v41 = vld [vmem:[#allocation4 + $0x110] sm:$0xff]  ;;  %v2253_v43 = vld [vmem:[#allocation4 + $0xe8] sm:$0xff] }
  0x1e   :  { %174 = vmatprep.mubr.f32.mxu0 %v3165_v1  ;;  %287 = vmatprep.mubr.f32.mxu1 %v3165_v1  ;;  %v43_v42 = vld [vmem:[%s3158_s0 + $0x20] sm:$0xff]  ;;  %v2261_v46 = vld [vmem:[#allocation4 + $0xf0] sm:$0xff]  ;;  %v2265_v47 = vld [vmem:[#allocation4 + $0xc8] sm:$0xff] }
  0x1f   :  { %431 = vmatpush1.msra.mxu0 %v2180_v22  ;;  %502 = vmatpush1.msra.mxu1 %v2182_v23  ;;  %v2255_v44 = vld [vmem:[#allocation4 + $0xf8] sm:$0xff]  ;;  %v2259_v45 = vld [vmem:[#allocation4 + $0xe0] sm:$0xff]  ;;  %v2275_v50 = vld [vmem:[#allocation4 + $0xd0] sm:$0xff] }
  0x20   :  { %1869 = vmatmul.mubr.msk.f32.gmra.mxu0 %vm73_vm0, %v41_v24  ;;  %1877 = vmatmul.mubr.msk.f32.gmra.mxu1 %vm73_vm0, %v41_v24  ;;  %v2267_v48 = vld [vmem:[#allocation4 + $0xd8] sm:$0xff]  ;;  %v2273_v49 = vld [vmem:[#allocation4 + $0xc0] sm:$0xff]  ;;  %v2284_v52 = vld [vmem:[#allocation4 + $0xa8] sm:$0xff] }
  0x21   :  { %432 = vmatprep.subr.mxu0 %v2191_v25  ;;  %503 = vmatprep.subr.mxu1 %v2193_v26  ;;  %v44_v51 = vld [vmem:[%s3158_s0 + $0x28] sm:$0xff]  ;;  %v2286_v53 = vld [vmem:[#allocation4 + $0xb8] sm:$0xff]  ;;  %v2292_v55 = vld [vmem:[#allocation4 + $0xb0] sm:$0xff] }
  0x22   :  { %433 = vmatpush1.msra.mxu0 %v2197_v27  ;;  %504 = vmatpush1.msra.mxu1 %v2199_v28  ;;  %v2290_v54 = vld [vmem:[#allocation4 + $0xa0] sm:$0xff]  ;;  %3265 = vst [vmem:[#allocation9_spill] sm:$0xff] %v2292_v55  ;;  %v2296_v56 = vld [vmem:[#allocation4 + $0x88] sm:$0xff]  ;;  %v2298_v57 = vld [vmem:[#allocation4 + $0x98] sm:$0xff] }
  0x23   :  { %434 = vmatprep.subr.mxu0 %v2203_v29  ;;  %505 = vmatprep.subr.mxu1 %v2205_v30  ;;  %3266 = vst [vmem:[#allocation10_spill] sm:$0xff] %v2296_v56  ;;  %3267 = vst [vmem:[#allocation11_spill] sm:$0xff] %v2298_v57  ;;  %v2304_v58 = vld [vmem:[#allocation4 + $0x80] sm:$0xff]  ;;  %v2306_v59 = vld [vmem:[#allocation4 + $0x90] sm:$0xff] }
  0x24   :  { %180 = vmatprep.mubr.f32.mxu0 %v3165_v1  ;;  %293 = vmatprep.mubr.f32.mxu1 %v3165_v1  ;;  %3268 = vst [vmem:[#allocation12_spill] sm:$0xff] %v2304_v58  ;;  %3269 = vst [vmem:[#allocation13_spill] sm:$0xff] %v2306_v59  ;;  %v45_v60 = vld [vmem:[%s3158_s0 + $0x30] sm:$0xff]  ;;  %v2317_v62 = vld [vmem:[#allocation4 + $0x78] sm:$0xff] }
  0x25   :  { %435 = vmatpush1.msra.mxu0 %v2211_v31  ;;  %506 = vmatpush1.msra.mxu1 %v2213_v32  ;;  %v2315_v61 = vld [vmem:[#allocation4 + $0x68] sm:$0xff]  ;;  %3271 = vst [vmem:[#allocation15_spill] sm:$0xff] %v2317_v62  ;;  %v2321_v63 = vld [vmem:[#allocation4 + $0x60] sm:$0xff]  ;;  %v2323_v0 = vld [vmem:[#allocation4 + $0x70] sm:$0xff] }
  0x26   :  { %1870 = vmatmul.mubr.msk.f32.gmra.mxu0 %vm73_vm0, %v42_v33  ;;  %1878 = vmatmul.mubr.msk.f32.gmra.mxu1 %vm73_vm0, %v42_v33  ;;  %3270 = vst [vmem:[#allocation14_spill] sm:$0xff] %v2315_v61  ;;  %3272 = vst [vmem:[#allocation16_spill] sm:$0xff] %v2321_v63  ;;  %v2327_v2 = vld [vmem:[#allocation4 + $0x48] sm:$0xff]  ;;  %v2329_v3 = vld [vmem:[#allocation4 + $0x58] sm:$0xff] }
  0x27   :  { %436 = vmatprep.subr.mxu0 %v2222_v34  ;;  %507 = vmatprep.subr.mxu1 %v2224_v35  ;;  %3273 = vst [vmem:[#allocation17_spill] sm:$0xff] %v2323_v0  ;;  %3274 = vst [vmem:[#allocation18_spill] sm:$0xff] %v2327_v2  ;;  %v2335_v4 = vld [vmem:[#allocation4 + $0x40] sm:$0xff]  ;;  %v2337_v5 = vld [vmem:[#allocation4 + $0x50] sm:$0xff] }
  0x28   :  { %437 = vmatpush1.msra.mxu0 %v2228_v36  ;;  %508 = vmatpush1.msra.mxu1 %v2230_v37  ;;  %3275 = vst [vmem:[#allocation19_spill] sm:$0xff] %v2329_v3  ;;  %3276 = vst [vmem:[#allocation20_spill] sm:$0xff] %v2335_v4  ;;  %v46_v6 = vld [vmem:[%s3158_s0 + $0x38] sm:$0xff]  ;;  %v2346_v15 = vld [vmem:[#allocation4 + $0x28] sm:$0xff] }
  0x29   :  { %438 = vmatprep.subr.mxu0 %v2234_v38  ;;  %509 = vmatprep.subr.mxu1 %v2236_v39  ;;  %3277 = vst [vmem:[#allocation21_spill] sm:$0xff] %v2337_v5  ;;  %3278 = vst [vmem:[#allocation22_spill] sm:$0xff] %v2346_v15  ;;  %v2348_v24 = vld [vmem:[#allocation4 + $0x38] sm:$0xff]  ;;  %v2352_v33 = vld [vmem:[#allocation4 + $0x20] sm:$0xff] }
  0x2a   :  { %186 = vmatprep.mubr.f32.mxu0 %v3165_v1  ;;  %299 = vmatprep.mubr.f32.mxu1 %v3165_v1  ;;  %3279 = vst [vmem:[#allocation23_spill] sm:$0xff] %v2348_v24  ;;  %3280 = vst [vmem:[#allocation24_spill] sm:$0xff] %v2352_v33 }
  0x2b   :  { %439 = vmatpush1.msra.mxu0 %v2242_v40  ;;  %510 = vmatpush1.msra.mxu1 %v2244_v41 }
  0x2c   :  { %1871 = vmatmul.mubr.msk.f32.gmra.mxu0 %vm73_vm0, %v43_v42  ;;  %1879 = vmatmul.mubr.msk.f32.gmra.mxu1 %vm73_vm0, %v43_v42  ;;  %v2354_v42 = vld [vmem:[#allocation4 + $0x30] sm:$0xff] }
  0x2d   :  { %440 = vmatprep.subr.mxu0 %v2253_v43  ;;  %511 = vmatprep.subr.mxu1 %v2255_v44  ;;  %3281 = vst [vmem:[#allocation25_spill] sm:$0xff] %v2354_v42 }
  0x2e   :  { %441 = vmatpush1.msra.mxu0 %v2259_v45  ;;  %512 = vmatpush1.msra.mxu1 %v2261_v46 }
  0x2f   :  { %442 = vmatprep.subr.mxu0 %v2265_v47  ;;  %513 = vmatprep.subr.mxu1 %v2267_v48 }
  0x30   :  { %192 = vmatprep.mubr.f32.mxu0 %v3165_v1  ;;  %305 = vmatprep.mubr.f32.mxu1 %v3165_v1 }
  0x31   :  { %443 = vmatpush1.msra.mxu0 %v2273_v49  ;;  %514 = vmatpush1.msra.mxu1 %v2275_v50 }
  0x32   :  { %1872 = vmatmul.mubr.msk.f32.gmra.mxu0 %vm73_vm0, %v44_v51  ;;  %1880 = vmatmul.mubr.msk.f32.gmra.mxu1 %vm73_vm0, %v44_v51  ;;  %v2358_v51 = vld [vmem:[#allocation4 + $0x8] sm:$0xff] }
  0x33   :  { %444 = vmatprep.subr.mxu0 %v2284_v52  ;;  %515 = vmatprep.subr.mxu1 %v2286_v53  ;;  %3282 = vst [vmem:[#allocation26_spill] sm:$0xff] %v2358_v51 }
  0x34   :  { %445 = vmatpush1.msra.mxu0 %v2290_v54  ;;  %516 = vmatpush1.msra.mxu1 %v2292_v55 }
  0x35   :  { %446 = vmatprep.subr.mxu0 %v2296_v56  ;;  %517 = vmatprep.subr.mxu1 %v2298_v57 }
  0x36   :  { %198 = vmatprep.mubr.f32.mxu0 %v3165_v1  ;;  %311 = vmatprep.mubr.f32.mxu1 %v3165_v1 }
  0x37   :  { %447 = vmatpush1.msra.mxu0 %v2304_v58  ;;  %518 = vmatpush1.msra.mxu1 %v2306_v59 }
  0x38   :  { %1873 = vmatmul.mubr.msk.f32.gmra.mxu0 %vm73_vm0, %v45_v60  ;;  %1881 = vmatmul.mubr.msk.f32.gmra.mxu1 %vm73_vm0, %v45_v60  ;;  %v2360_v60 = vld [vmem:[#allocation4 + $0x18] sm:$0xff] }
  0x39   :  { %448 = vmatprep.subr.mxu0 %v2315_v61  ;;  %519 = vmatprep.subr.mxu1 %v2317_v62  ;;  %3283 = vst [vmem:[#allocation27_spill] sm:$0xff] %v2360_v60 }
  0x3a   :  { %449 = vmatpush1.msra.mxu0 %v2321_v63  ;;  %520 = vmatpush1.msra.mxu1 %v2323_v0 }
  0x3b   :  { %450 = vmatprep.subr.mxu0 %v2327_v2  ;;  %521 = vmatprep.subr.mxu1 %v2329_v3 }
  0x3c   :  { %204 = vmatprep.mubr.f32.mxu0 %v3165_v1  ;;  %317 = vmatprep.mubr.f32.mxu1 %v3165_v1  ;;  %v2364_v1 = vld [vmem:[#allocation4] sm:$0xff] }
  0x3d   :  { %451 = vmatpush1.msra.mxu0 %v2335_v4  ;;  %522 = vmatpush1.msra.mxu1 %v2337_v5  ;;  %3284 = vst [vmem:[#allocation28_spill] sm:$0xff] %v2364_v1  ;;  %v2368_v5 = vld [vmem:[#allocation4 + $0x10] sm:$0xff] }
  0x3e   :  { %1874 = vmatmul.mubr.msk.f32.gmra.mxu0 %vm73_vm0, %v46_v6  ;;  %1882 = vmatmul.mubr.msk.f32.gmra.mxu1 %vm73_vm0, %v46_v6  ;;  %3285 = vst [vmem:[#allocation29_spill] sm:$0xff] %v2368_v5  ;;  %v3286_v6 = vmov 0.0  }
  0x3f   :  { %452 = vmatprep.subr.mxu0 %v2346_v15  ;;  %523 = vmatprep.subr.mxu1 %v2348_v24 }
  0x40   :  { %453 = vmatpush1.msra.mxu0 %v2352_v33  ;;  %524 = vmatpush1.msra.mxu1 %v2354_v42 }
  0x41   :  { %454 = vmatprep.subr.mxu0 %v2358_v51  ;;  %525 = vmatprep.subr.mxu1 %v2360_v60 }
  0x42   :  { %455 = vmatpush1.msra.mxu0 %v2364_v1  ;;  %488 = vmatprep.mubr.f32.mxu0 %v3286_v6 }
  0x43   :  { %526 = vmatpush1.msra.mxu1 %v2368_v5  ;;  %559 = vmatprep.mubr.f32.mxu1 %v3286_v6 }
  0x44   :  { %489 = vmatmul.mubr.f32.vlgmr.msra.gmra.mxu0 %v3286_v6  ;;  %560 = vmatmul.mubr.f32.vlgmr.msra.gmra.mxu1 %v3286_v6 }
  0x45   :  { %602 = vmatprep.subr.mxu0 %v2131_v7  ;;  %673 = vmatprep.subr.mxu1 %v2133_v8 }
  0x46   :  { %603 = vmatpush1.msra.mxu0 %v2135_v9  ;;  %674 = vmatpush1.msra.mxu1 %v2137_v10 }
  0x47   :  { %604 = vmatprep.subr.mxu0 %v2141_v11  ;;  %675 = vmatprep.subr.mxu1 %v2143_v12 }
  0x48   :  { %605 = vmatpush1.msra.mxu0 %v2149_v13  ;;  %676 = vmatpush1.msra.mxu1 %v2151_v14 }
  0x49   :  { %606 = vmatprep.subr.mxu0 %v2160_v16  ;;  %677 = vmatprep.subr.mxu1 %v2162_v17 }
  0x4a   :  { %607 = vmatpush1.msra.mxu0 %v2166_v18  ;;  %678 = vmatpush1.msra.mxu1 %v2168_v19 }
  0x4b   :  { %608 = vmatprep.subr.mxu0 %v2172_v20  ;;  %679 = vmatprep.subr.mxu1 %v2174_v21 }
  0x4c   :  { %609 = vmatpush1.msra.mxu0 %v2180_v22  ;;  %680 = vmatpush1.msra.mxu1 %v2182_v23 }
  0x4d   :  { %610 = vmatprep.subr.mxu0 %v2191_v25  ;;  %681 = vmatprep.subr.mxu1 %v2193_v26 }
  0x4e   :  { %611 = vmatpush1.msra.mxu0 %v2197_v27  ;;  %682 = vmatpush1.msra.mxu1 %v2199_v28 }
  0x4f   :  { %612 = vmatprep.subr.mxu0 %v2203_v29  ;;  %683 = vmatprep.subr.mxu1 %v2205_v30 }
  0x50   :  { %613 = vmatpush1.msra.mxu0 %v2211_v31  ;;  %684 = vmatpush1.msra.mxu1 %v2213_v32 }
  0x51   :  { %614 = vmatprep.subr.mxu0 %v2222_v34  ;;  %685 = vmatprep.subr.mxu1 %v2224_v35 }
  0x52   :  { %615 = vmatpush1.msra.mxu0 %v2228_v36  ;;  %686 = vmatpush1.msra.mxu1 %v2230_v37 }
  0x53   :  { %616 = vmatprep.subr.mxu0 %v2234_v38  ;;  %687 = vmatprep.subr.mxu1 %v2236_v39 }
  0x54   :  { %617 = vmatpush1.msra.mxu0 %v2242_v40  ;;  %688 = vmatpush1.msra.mxu1 %v2244_v41 }
  0x55   :  { %618 = vmatprep.subr.mxu0 %v2253_v43  ;;  %689 = vmatprep.subr.mxu1 %v2255_v44 }
  0x56   :  { %619 = vmatpush1.msra.mxu0 %v2259_v45  ;;  %690 = vmatpush1.msra.mxu1 %v2261_v46 }
  0x57   :  { %620 = vmatprep.subr.mxu0 %v2265_v47  ;;  %691 = vmatprep.subr.mxu1 %v2267_v48 }
  0x58   :  { %621 = vmatpush1.msra.mxu0 %v2273_v49  ;;  %692 = vmatpush1.msra.mxu1 %v2275_v50 }
  0x59   :  { %622 = vmatprep.subr.mxu0 %v2284_v52  ;;  %693 = vmatprep.subr.mxu1 %v2286_v53 }
  0x5a   :  { %623 = vmatpush1.msra.mxu0 %v2290_v54  ;;  %694 = vmatpush1.msra.mxu1 %v2292_v55 }
  0x5b   :  { %624 = vmatprep.subr.mxu0 %v2296_v56  ;;  %695 = vmatprep.subr.mxu1 %v2298_v57  ;;  %v3287_v56 = vld [vmem:[#allocation21_spill] sm:$0xff] }
  0x5c   :  { %625 = vmatpush1.msra.mxu0 %v2304_v58  ;;  %696 = vmatpush1.msra.mxu1 %v2306_v59 }
  0x5d   :  { %626 = vmatprep.subr.mxu0 %v2315_v61  ;;  %697 = vmatprep.subr.mxu1 %v2317_v62 }
  0x5e   :  { %627 = vmatpush1.msra.mxu0 %v2321_v63  ;;  %698 = vmatpush1.msra.mxu1 %v2323_v0 }
  0x5f   :  { %628 = vmatprep.subr.mxu0 %v2327_v2  ;;  %699 = vmatprep.subr.mxu1 %v2329_v3 }
  0x60   :  { %629 = vmatpush1.msra.mxu0 %v2335_v4  ;;  %700 = vmatpush1.msra.mxu1 %v3287_v56 }
  0x61   :  { %630 = vmatprep.subr.mxu0 %v2346_v15  ;;  %701 = vmatprep.subr.mxu1 %v2348_v24  ;;  %v53_v24 = vlaneseq }
  0x62   :  { %631 = vmatpush1.msra.mxu0 %v2352_v33  ;;  %702 = vmatpush1.msra.mxu1 %v2354_v42 }
  0x63   :  { %632 = vmatprep.subr.mxu0 %v2358_v51  ;;  %703 = vmatprep.subr.mxu1 %v2360_v60  ;;  %v54_v33 = vshrl.u32 %v53_v24, 7 }
  0x64   :  { %633 = vmatpush1.msra.mxu0 %v2364_v1  ;;  %666 = vmatprep.mubr.f32.mxu0 %v3286_v6  ;;  %v51_v1 = vld [vmem:[%s3161_s3] sm:$0xf] }
  0x65   :  { %704 = vmatpush1.msra.mxu1 %v2368_v5  ;;  %737 = vmatprep.mubr.f32.mxu1 %v3286_v6  ;;  %v55_v51 = vsub.s32 0, %v54_v33  ;;  %v63_v60 = vsub.s32 2, %v54_v33  ;;  %v59_v6 = vsub.s32 1, %v54_v33 }
  0x66   :  { %781 = vmatprep.subr.mxu0 %v2131_v7  ;;  %852 = vmatprep.subr.mxu1 %v2133_v8  ;;  %v67_v7 = vsub.s32 3, %v54_v33 }
  0x67   :  { %v56_v4 = vrot.slane %v51_v1, %v55_v51  ;;  %v2457_v8 = vrot.slane %v51_v1, %v63_v60  ;;  %v60_v2 = vrot.slane %v51_v1, %v59_v6 }
  0x68   :  { %v2459_v0 = vrot.slane %v51_v1, %v67_v7 }
  0xd4   :  { %v2446_v15 = vpop.f32.mrf.mxu0  ;;  %v2448_v42 = vpop.f32.mrf.mxu1 }
  0xd6   :  { %v2453_v56 = vpop.f32.mrf.mxu0  ;;  %v2455_v5 = vpop.f32.mrf.mxu1 }
  0xda   :  { %v170_v24 = vpop.f32.mrf.mxu0  ;;  %v283_v3 = vpop.f32.mrf.mxu1 }
  0xdb   :  { %v2461_v63 = vadd.f32 %v170_v24, %v56_v4  ;;  %v2464_v62 = vadd.f32 %v283_v3, %v2457_v8 }
  0xdc   :  { %v172_v61 = vpop.f32.mrf.mxu0  ;;  %v285_v59 = vpop.f32.mrf.mxu1 }
  0xdd   :  { %3288 = vst [vmem:[#allocation30_spill] sm:$0xff] %v2461_v63  ;;  %3289 = vst [vmem:[#allocation31_spill] sm:$0xff] %v2464_v62  ;;  %v2466_v58 = vadd.f32 %v172_v61, %v60_v2  ;;  %v2469_v57 = vadd.f32 %v285_v59, %v2459_v0 }
  0xdf   :  { %3290 = vst [vmem:[#allocation32_spill] sm:$0xff] %v2466_v58  ;;  %3291 = vst [vmem:[#allocation33_spill] sm:$0xff] %v2469_v57 }
  0xe0   :  { %v176_v33 = vpop.f32.mrf.mxu0  ;;  %v289_v51 = vpop.f32.mrf.mxu1 }
  0xe1   :  { %v2471_v60 = vadd.f32 %v176_v33, %v56_v4  ;;  %v2474_v6 = vadd.f32 %v289_v51, %v2457_v8 }
  0xe2   :  { %v178_v1 = vpop.f32.mrf.mxu0  ;;  %v291_v7 = vpop.f32.mrf.mxu1 }
  0xe3   :  { %3292 = vst [vmem:[#allocation34_spill] sm:$0xff] %v2471_v60  ;;  %3293 = vst [vmem:[#allocation35_spill] sm:$0xff] %v2474_v6  ;;  %v2476_v24 = vadd.f32 %v178_v1, %v60_v2  ;;  %v2479_v3 = vadd.f32 %v291_v7, %v2459_v0 }
  0xe5   :  { %3294 = vst [vmem:[#allocation36_spill] sm:$0xff] %v2476_v24  ;;  %3295 = vst [vmem:[#allocation37_spill] sm:$0xff] %v2479_v3 }
  0xe6   :  { %v182_v62 = vpop.f32.mrf.mxu0  ;;  %v295_v61 = vpop.f32.mrf.mxu1 }
  0xe7   :  { %v2481_v58 = vadd.f32 %v182_v62, %v56_v4  ;;  %v2484_v59 = vadd.f32 %v295_v61, %v2457_v8 }
  0xe8   :  { %v184_v57 = vpop.f32.mrf.mxu0  ;;  %v297_v33 = vpop.f32.mrf.mxu1 }
  0xe9   :  { %3296 = vst [vmem:[#allocation38_spill] sm:$0xff] %v2481_v58  ;;  %3297 = vst [vmem:[#allocation39_spill] sm:$0xff] %v2484_v59  ;;  %v2486_v60 = vadd.f32 %v184_v57, %v60_v2  ;;  %v2489_v51 = vadd.f32 %v297_v33, %v2459_v0 }
  0xeb   :  { %3298 = vst [vmem:[#allocation40_spill] sm:$0xff] %v2486_v60  ;;  %3299 = vst [vmem:[#allocation41_spill] sm:$0xff] %v2489_v51 }
  0xec   :  { %v188_v6 = vpop.f32.mrf.mxu0  ;;  %v301_v1 = vpop.f32.mrf.mxu1 }
  0xed   :  { %v2491_v24 = vadd.f32 %v188_v6, %v56_v4  ;;  %v2494_v7 = vadd.f32 %v301_v1, %v2457_v8 }
  0xee   :  { %v190_v3 = vpop.f32.mrf.mxu0  ;;  %v303_v62 = vpop.f32.mrf.mxu1 }
  0xef   :  { %3300 = vst [vmem:[#allocation42_spill] sm:$0xff] %v2491_v24  ;;  %3301 = vst [vmem:[#allocation43_spill] sm:$0xff] %v2494_v7  ;;  %v2496_v58 = vadd.f32 %v190_v3, %v60_v2  ;;  %v2499_v61 = vadd.f32 %v303_v62, %v2459_v0 }
  0xf1   :  { %3302 = vst [vmem:[#allocation44_spill] sm:$0xff] %v2496_v58  ;;  %3303 = vst [vmem:[#allocation45_spill] sm:$0xff] %v2499_v61 }
  0xf2   :  { %v194_v59 = vpop.f32.mrf.mxu0  ;;  %v307_v57 = vpop.f32.mrf.mxu1 }
  0xf3   :  { %v2501_v60 = vadd.f32 %v194_v59, %v56_v4  ;;  %v2504_v33 = vadd.f32 %v307_v57, %v2457_v8 }
  0xf4   :  { %v196_v51 = vpop.f32.mrf.mxu0  ;;  %v309_v6 = vpop.f32.mrf.mxu1 }
  0xf5   :  { %3304 = vst [vmem:[#allocation46_spill] sm:$0xff] %v2501_v60  ;;  %3305 = vst [vmem:[#allocation47_spill] sm:$0xff] %v2504_v33  ;;  %v2506_v24 = vadd.f32 %v196_v51, %v60_v2  ;;  %v2509_v1 = vadd.f32 %v309_v6, %v2459_v0 }
  0xf7   :  { %3306 = vst [vmem:[#allocation48_spill] sm:$0xff] %v2506_v24  ;;  %3307 = vst [vmem:[#allocation49_spill] sm:$0xff] %v2509_v1 }
  0xf8   :  { %v200_v7 = vpop.f32.mrf.mxu0  ;;  %v313_v3 = vpop.f32.mrf.mxu1 }
  0xf9   :  { %v2511_v58 = vadd.f32 %v200_v7, %v56_v4  ;;  %v2514_v62 = vadd.f32 %v313_v3, %v2457_v8 }
  0xfa   :  { %v202_v61 = vpop.f32.mrf.mxu0  ;;  %v315_v59 = vpop.f32.mrf.mxu1 }
  0xfb   :  { %3308 = vst [vmem:[#allocation50_spill] sm:$0xff] %v2511_v58  ;;  %3309 = vst [vmem:[#allocation51_spill] sm:$0xff] %v2514_v62  ;;  %v2516_v60 = vadd.f32 %v202_v61, %v60_v2  ;;  %v2519_v57 = vadd.f32 %v315_v59, %v2459_v0  ;;  %v165_v61 = vadd.f32 %v2446_v15, %v56_v4 }
  0xfc   :  { %v167_v59 = vadd.f32 %v2453_v56, %v60_v2 }
  0xfd   :  { %3310 = vst [vmem:[#allocation52_spill] sm:$0xff] %v2516_v60  ;;  %3311 = vst [vmem:[#allocation53_spill] sm:$0xff] %v2519_v57 }
  0xfe   :  { %v206_v33 = vpop.f32.mrf.mxu0  ;;  %v319_v51 = vpop.f32.mrf.mxu1 }
  0xff   :  { %v2521_v24 = vadd.f32 %v206_v33, %v56_v4  ;;  %v2524_v6 = vadd.f32 %v319_v51, %v2457_v8  ;;  %v280_v51 = vadd.f32 %v2455_v5, %v2459_v0 }
 0x100   :  { %v208_v1 = vpop.f32.mrf.mxu0  ;;  %v321_v7 = vpop.f32.mrf.mxu1 }
 0x101   :  { %3312 = vst [vmem:[#allocation54_spill] sm:$0xff] %v2521_v24  ;;  %3313 = vst [vmem:[#allocation55_spill] sm:$0xff] %v2524_v6  ;;  %v2526_v58 = vadd.f32 %v208_v1, %v60_v2  ;;  %v2529_v3 = vadd.f32 %v321_v7, %v2459_v0  ;;  %v278_v7 = vadd.f32 %v2448_v42, %v2457_v8 }
 0x103   :  { %3314 = vst [vmem:[#allocation56_spill] sm:$0xff] %v2526_v58  ;;  %3315 = vst [vmem:[#allocation57_spill] sm:$0xff] %v2529_v3  ;;  %v3336_v58 = vmov 0.0  }
 0x104   :  { %v490_v62 = vpop.f32.mrf.mxu0  ;;  %v561_v60 = vpop.f32.mrf.mxu1 }
 0x105   :  { %v566_v57 = vadd.f32 %v490_v62, %v165_v61  ;;  %v568_v4 = vadd.f32 %v561_v60, %v278_v7  ;;  %v3321_v7 = vld [vmem:[#allocation14_spill] sm:$0xff] }
 0x106   :  { %v492_v63 = vpop.f32.mrf.mxu0  ;;  %v563_v55 = vpop.f32.mrf.mxu1 }
 0x107   :  { %v570_v33 = vmul.f32 0.5, %v566_v57  ;;  %v567_v24 = vadd.f32 %v492_v63, %v167_v59  ;;  %v569_v6 = vadd.f32 %v563_v55, %v280_v51  ;;  %v572_v15 = vmul.f32 0.5, %v568_v4  ;;  %v3319_v51 = vld [vmem:[#allocation12_spill] sm:$0xff]  ;;  %v3322_v4 = vld [vmem:[#allocation15_spill] sm:$0xff] }
 0x109   :  { %1903 = vtanh.f32 %v570_v33  ;;  %v571_v1 = vmul.f32 0.5, %v567_v24  ;;  %v3318_v33 = vld [vmem:[#allocation11_spill] sm:$0xff] }
 0x10b   :  { %1905 = vtanh.f32 %v571_v1  ;;  %v3320_v1 = vld [vmem:[#allocation13_spill] sm:$0xff] }
 0x10c   :  { %1907 = vtanh.f32 %v569_v6  ;;  %v3316_v6 = vld [vmem:[#allocation9_spill] sm:$0xff] }
 0x10d   :  { %1909 = vtanh.f32 %v572_v15  ;;  %v3323_v15 = vld [vmem:[#allocation16_spill] sm:$0xff] }
 0x116   :  { %v1904_v3 = vpop.eup %1903 }
 0x117   :  { %v576_v56 = vmul.f32 0.5, %v1904_v3  ;;  %v3317_v3 = vld [vmem:[#allocation10_spill] sm:$0xff] }
 0x118   :  { %v1906_v2 = vpop.eup %1905 }
 0x119   :  { %v579_v62 = vadd.f32 0.5, %v576_v56  ;;  %v577_v63 = vmul.f32 0.5, %v1906_v2  ;;  %v1908_v61 = vpop.eup %1907  ;;  %v3324_v56 = vld [vmem:[#allocation17_spill] sm:$0xff]  ;;  %v3325_v2 = vld [vmem:[#allocation18_spill] sm:$0xff] }
 0x11a   :  { %v1910_v55 = vpop.eup %1909 }
 0x11b   :  { %v580_v57 = vadd.f32 0.5, %v577_v63  ;;  %v584_v0 = vmul.f32 %v1908_v61, %v579_v62  ;;  %v578_v24 = vmul.f32 0.5, %v1910_v55  ;;  %v3326_v62 = vld [vmem:[#allocation19_spill] sm:$0xff]  ;;  %v3327_v63 = vld [vmem:[#allocation20_spill] sm:$0xff]  ;;  %v3329_v61 = vld [vmem:[#allocation22_spill] sm:$0xff] }
 0x11c   :  { %v3332_v55 = vld [vmem:[#allocation25_spill] sm:$0xff] }
 0x11d   :  { %v583_v59 = vmul.f32 0.0, %v580_v57  ;;  %v581_v8 = vadd.f32 0.5, %v578_v24  ;;  %v3328_v57 = vld [vmem:[#allocation21_spill] sm:$0xff]  ;;  %v3333_v24 = vld [vmem:[#allocation26_spill] sm:$0xff] }
 0x11f   :  { %v2537_v5 = vadd.f32 %v584_v0, %v583_v59  ;;  %v3330_v59 = vld [vmem:[#allocation23_spill] sm:$0xff]  ;;  %v3331_v0 = vld [vmem:[#allocation24_spill] sm:$0xff] }
 0x121   :  { %1911 = vtanh.f32 %v2537_v5 }
 0x12e   :  { %v1912_v42 = vpop.eup %1911 }
 0x12f   :  { %v2540_v60 = vmul.f32 %v1912_v42, %v581_v8  ;;  %v3334_v8 = vld [vmem:[#allocation27_spill] sm:$0xff]  ;;  %v3335_v42 = vld [vmem:[#allocation28_spill] sm:$0xff] }
 0x131   :  { %667 = vmatmul.mubr.f32.vlgmr.msra.gmra.mxu0 %v2540_v60  ;;  %738 = vmatmul.mubr.f32.vlgmr.msra.gmra.mxu1 %v2540_v60 }
 0x132   :  { %782 = vmatpush1.msra.mxu0 %v2135_v9  ;;  %853 = vmatpush1.msra.mxu1 %v2137_v10 }
 0x133   :  { %783 = vmatprep.subr.mxu0 %v2141_v11  ;;  %854 = vmatprep.subr.mxu1 %v2143_v12 }
 0x134   :  { %784 = vmatpush1.msra.mxu0 %v2149_v13  ;;  %855 = vmatpush1.msra.mxu1 %v2151_v14 }
 0x135   :  { %785 = vmatprep.subr.mxu0 %v2160_v16  ;;  %856 = vmatprep.subr.mxu1 %v2162_v17 }
 0x136   :  { %786 = vmatpush1.msra.mxu0 %v2166_v18  ;;  %857 = vmatpush1.msra.mxu1 %v2168_v19 }
 0x137   :  { %787 = vmatprep.subr.mxu0 %v2172_v20  ;;  %858 = vmatprep.subr.mxu1 %v2174_v21 }
 0x138   :  { %788 = vmatpush1.msra.mxu0 %v2180_v22  ;;  %859 = vmatpush1.msra.mxu1 %v2182_v23 }
 0x139   :  { %789 = vmatprep.subr.mxu0 %v2191_v25  ;;  %860 = vmatprep.subr.mxu1 %v2193_v26 }
 0x13a   :  { %790 = vmatpush1.msra.mxu0 %v2197_v27  ;;  %861 = vmatpush1.msra.mxu1 %v2199_v28 }
 0x13b   :  { %791 = vmatprep.subr.mxu0 %v2203_v29  ;;  %862 = vmatprep.subr.mxu1 %v2205_v30 }
 0x13c   :  { %792 = vmatpush1.msra.mxu0 %v2211_v31  ;;  %863 = vmatpush1.msra.mxu1 %v2213_v32 }
 0x13d   :  { %793 = vmatprep.subr.mxu0 %v2222_v34  ;;  %864 = vmatprep.subr.mxu1 %v2224_v35 }
 0x13e   :  { %794 = vmatpush1.msra.mxu0 %v2228_v36  ;;  %865 = vmatpush1.msra.mxu1 %v2230_v37 }
 0x13f   :  { %795 = vmatprep.subr.mxu0 %v2234_v38  ;;  %866 = vmatprep.subr.mxu1 %v2236_v39 }
 0x140   :  { %796 = vmatpush1.msra.mxu0 %v2242_v40  ;;  %867 = vmatpush1.msra.mxu1 %v2244_v41 }
 0x141   :  { %797 = vmatprep.subr.mxu0 %v2253_v43  ;;  %868 = vmatprep.subr.mxu1 %v2255_v44 }
 0x142   :  { %798 = vmatpush1.msra.mxu0 %v2259_v45  ;;  %869 = vmatpush1.msra.mxu1 %v2261_v46 }
 0x143   :  { %799 = vmatprep.subr.mxu0 %v2265_v47  ;;  %870 = vmatprep.subr.mxu1 %v2267_v48 }
 0x144   :  { %800 = vmatpush1.msra.mxu0 %v2273_v49  ;;  %871 = vmatpush1.msra.mxu1 %v2275_v50 }
 0x145   :  { %801 = vmatprep.subr.mxu0 %v2284_v52  ;;  %872 = vmatprep.subr.mxu1 %v2286_v53 }
 0x146   :  { %802 = vmatpush1.msra.mxu0 %v2290_v54  ;;  %873 = vmatpush1.msra.mxu1 %v3316_v6 }
 0x147   :  { %803 = vmatprep.subr.mxu0 %v3317_v3  ;;  %874 = vmatprep.subr.mxu1 %v3318_v33 }
 0x148   :  { %804 = vmatpush1.msra.mxu0 %v3319_v51  ;;  %875 = vmatpush1.msra.mxu1 %v3320_v1 }
 0x149   :  { %805 = vmatprep.subr.mxu0 %v3321_v7  ;;  %876 = vmatprep.subr.mxu1 %v3322_v4  ;;  %v3342_v4 = vld [vmem:[#allocation33_spill] sm:$0xff] }
 0x14a   :  { %806 = vmatpush1.msra.mxu0 %v3323_v15  ;;  %877 = vmatpush1.msra.mxu1 %v3324_v56 }
 0x14b   :  { %807 = vmatprep.subr.mxu0 %v3325_v2  ;;  %878 = vmatprep.subr.mxu1 %v3326_v62  ;;  %v3337_v62 = vld [vmem:[#allocation29_spill] sm:$0xff] }
 0x14c   :  { %808 = vmatpush1.msra.mxu0 %v3327_v63  ;;  %879 = vmatpush1.msra.mxu1 %v3328_v57  ;;  %v3338_v57 = vld [vmem:[#allocation7_spill] sm:$0xff]  ;;  %v3340_v63 = vld [vmem:[#allocation30_spill] sm:$0xff] }
 0x14d   :  { %809 = vmatprep.subr.mxu0 %v3329_v61  ;;  %880 = vmatprep.subr.mxu1 %v3330_v59  ;;  %v3339_v61 = vld [vmem:[#allocation8_spill] sm:$0xff] }
 0x14e   :  { %810 = vmatpush1.msra.mxu0 %v3331_v0  ;;  %881 = vmatpush1.msra.mxu1 %v3332_v55 }
 0x14f   :  { %811 = vmatprep.subr.mxu0 %v3333_v24  ;;  %882 = vmatprep.subr.mxu1 %v3334_v8  ;;  %v3341_v8 = vld [vmem:[#allocation32_spill] sm:$0xff] }
 0x150   :  { %812 = vmatpush1.msra.mxu0 %v3335_v42  ;;  %845 = vmatprep.mubr.f32.mxu0 %v3336_v58 }
 0x151   :  { %883 = vmatpush1.msra.mxu1 %v3337_v62  ;;  %916 = vmatprep.mubr.f32.mxu1 %v3336_v58  ;;  %v3343_v62 = vld [vmem:[#allocation31_spill] sm:$0xff] }
 0x152   :  { %960 = vmatprep.subr.mxu0 %v3338_v57  ;;  %1031 = vmatprep.subr.mxu1 %v3339_v61 }
 0x1f1   :  { %v668_v59 = vpop.f32.mrf.mxu0  ;;  %v739_v0 = vpop.f32.mrf.mxu1 }
 0x1f2   :  { %v744_v55 = vadd.f32 %v668_v59, %v3340_v63  ;;  %v746_v58 = vadd.f32 %v739_v0, %v3343_v62  ;;  %v3367_v0 = vld [vmem:[#allocation34_spill] sm:$0xff] }
 0x1f3   :  { %v670_v2 = vpop.f32.mrf.mxu0  ;;  %v741_v24 = vpop.f32.mrf.mxu1 }
 0x1f4   :  { %v748_v56 = vmul.f32 0.5, %v744_v55  ;;  %v745_v15 = vadd.f32 %v670_v2, %v3341_v8  ;;  %v747_v7 = vadd.f32 %v741_v24, %v3342_v4  ;;  %v750_v57 = vmul.f32 0.5, %v746_v58  ;;  %v1883_v58 = vld [vmem:[%s3162_s4] ss:$0 sm:$0xff] }
 0x1f6   :  { %1913 = vtanh.f32 %v748_v56  ;;  %v749_v42 = vmul.f32 0.5, %v745_v15 }
 0x1f8   :  { %1915 = vtanh.f32 %v749_v42 }
 0x1f9   :  { %1917 = vtanh.f32 %v747_v7 }
 0x1fa   :  { %1919 = vtanh.f32 %v750_v57 }
 0x203   :  { %v1914_v1 = vpop.eup %1913 }
 0x204   :  { %v754_v61 = vmul.f32 0.5, %v1914_v1 }
 0x205   :  { %v1916_v51 = vpop.eup %1915 }
 0x206   :  { %v757_v33 = vadd.f32 0.5, %v754_v61  ;;  %v755_v63 = vmul.f32 0.5, %v1916_v51  ;;  %v1918_v59 = vpop.eup %1917  ;;  %v1885_v51 = vld [vmem:[%s3162_s4 + $0x1] ss:$0 sm:$0xff]  ;;  %v3368_v61 = vld [vmem:[#allocation36_spill] sm:$0xff] }
 0x207   :  { %v1920_v4 = vpop.eup %1919 }
 0x208   :  { %v758_v3 = vadd.f32 0.5, %v755_v63  ;;  %v762_v55 = vmul.f32 %v1918_v59, %v757_v33  ;;  %v756_v7 = vmul.f32 0.5, %v1920_v4  ;;  %v595_v33 = vmul.f32 %v1883_v58, %v2540_v60  ;;  %v3370_v4 = vld [vmem:[#allocation35_spill] sm:$0xff] }
 0x20a   :  { %v761_v2 = vmul.f32 %v758_v3, %v2537_v5  ;;  %v759_v15 = vadd.f32 0.5, %v756_v7 }
 0x20c   :  { %v2615_v56 = vadd.f32 %v762_v55, %v761_v2  ;;  %v3369_v55 = vld [vmem:[#allocation37_spill] sm:$0xff] }
 0x20e   :  { %1921 = vtanh.f32 %v2615_v56 }
 0x21b   :  { %v1922_v62 = vpop.eup %1921 }
 0x21c   :  { %v765_v1 = vmul.f32 %v1922_v62, %v759_v15 }
 0x21e   :  { %v774_v5 = vmul.f32 %v1885_v51, %v765_v1  ;;  %846 = vmatmul.mubr.f32.vlgmr.msra.gmra.mxu0 %v765_v1  ;;  %917 = vmatmul.mubr.f32.vlgmr.msra.gmra.mxu1 %v765_v1 }
 0x21f   :  { %961 = vmatpush1.msra.mxu0 %v2135_v9  ;;  %1032 = vmatpush1.msra.mxu1 %v2137_v10  ;;  %v3344_v9 = vld [vmem:[#allocation10_spill] sm:$0xff]  ;;  %v3345_v10 = vld [vmem:[#allocation11_spill] sm:$0xff] }
 0x220   :  { %962 = vmatprep.subr.mxu0 %v2141_v11  ;;  %1033 = vmatprep.subr.mxu1 %v2143_v12  ;;  %v2629_v3 = vadd.f32 %v774_v5, %v595_v33  ;;  %v3346_v11 = vld [vmem:[#allocation12_spill] sm:$0xff]  ;;  %v3347_v12 = vld [vmem:[#allocation13_spill] sm:$0xff] }
 0x221   :  { %963 = vmatpush1.msra.mxu0 %v2149_v13  ;;  %1034 = vmatpush1.msra.mxu1 %v2151_v14  ;;  %v3348_v13 = vld [vmem:[#allocation14_spill] sm:$0xff]  ;;  %v3349_v14 = vld [vmem:[#allocation15_spill] sm:$0xff] }
 0x222   :  { %964 = vmatprep.subr.mxu0 %v2160_v16  ;;  %1035 = vmatprep.subr.mxu1 %v2162_v17  ;;  %v3350_v16 = vld [vmem:[#allocation16_spill] sm:$0xff]  ;;  %v3351_v17 = vld [vmem:[#allocation17_spill] sm:$0xff] }
 0x223   :  { %965 = vmatpush1.msra.mxu0 %v2166_v18  ;;  %1036 = vmatpush1.msra.mxu1 %v2168_v19  ;;  %v3352_v18 = vld [vmem:[#allocation18_spill] sm:$0xff]  ;;  %v3353_v19 = vld [vmem:[#allocation19_spill] sm:$0xff] }
 0x224   :  { %966 = vmatprep.subr.mxu0 %v2172_v20  ;;  %1037 = vmatprep.subr.mxu1 %v2174_v21  ;;  %v3354_v20 = vld [vmem:[#allocation20_spill] sm:$0xff]  ;;  %v3355_v21 = vld [vmem:[#allocation21_spill] sm:$0xff] }
 0x225   :  { %967 = vmatpush1.msra.mxu0 %v2180_v22  ;;  %1038 = vmatpush1.msra.mxu1 %v2182_v23  ;;  %v3356_v22 = vld [vmem:[#allocation22_spill] sm:$0xff]  ;;  %v3357_v23 = vld [vmem:[#allocation23_spill] sm:$0xff] }
 0x226   :  { %968 = vmatprep.subr.mxu0 %v2191_v25  ;;  %1039 = vmatprep.subr.mxu1 %v2193_v26  ;;  %v3358_v25 = vld [vmem:[#allocation24_spill] sm:$0xff]  ;;  %v3359_v26 = vld [vmem:[#allocation25_spill] sm:$0xff] }
 0x227   :  { %969 = vmatpush1.msra.mxu0 %v2197_v27  ;;  %1040 = vmatpush1.msra.mxu1 %v2199_v28  ;;  %v3360_v27 = vld [vmem:[#allocation26_spill] sm:$0xff]  ;;  %v3361_v28 = vld [vmem:[#allocation27_spill] sm:$0xff] }
 0x228   :  { %970 = vmatprep.subr.mxu0 %v2203_v29  ;;  %1041 = vmatprep.subr.mxu1 %v2205_v30  ;;  %v3362_v29 = vld [vmem:[#allocation28_spill] sm:$0xff]  ;;  %v3363_v30 = vmov 0.0  }
 0x229   :  { %971 = vmatpush1.msra.mxu0 %v2211_v31  ;;  %1042 = vmatpush1.msra.mxu1 %v2213_v32  ;;  %v3364_v31 = vld [vmem:[#allocation29_spill] sm:$0xff]  ;;  %v2691_v32 = vld [vmem:[#allocation4 + $0x1e8] sm:$0xff] }
 0x22a   :  { %972 = vmatprep.subr.mxu0 %v2222_v34  ;;  %1043 = vmatprep.subr.mxu1 %v2224_v35  ;;  %3365 = vst [vmem:[#allocation9_spill] sm:$0xff] %v2691_v32  ;;  %v2694_v34 = vld [vmem:[#allocation4 + $0x1f8] sm:$0xff] }
 0x22b   :  { %973 = vmatpush1.msra.mxu0 %v2228_v36  ;;  %1044 = vmatpush1.msra.mxu1 %v2230_v37  ;;  %3366 = vst [vmem:[#allocation7_spill] sm:$0xff] %v2694_v34 }
 0x22c   :  { %974 = vmatprep.subr.mxu0 %v2234_v38  ;;  %1045 = vmatprep.subr.mxu1 %v2236_v39 }
 0x22d   :  { %975 = vmatpush1.msra.mxu0 %v2242_v40  ;;  %1046 = vmatpush1.msra.mxu1 %v2244_v41 }
 0x22e   :  { %976 = vmatprep.subr.mxu0 %v2253_v43  ;;  %1047 = vmatprep.subr.mxu1 %v2255_v44 }
 0x22f   :  { %977 = vmatpush1.msra.mxu0 %v2259_v45  ;;  %1048 = vmatpush1.msra.mxu1 %v2261_v46 }
 0x230   :  { %978 = vmatprep.subr.mxu0 %v2265_v47  ;;  %1049 = vmatprep.subr.mxu1 %v2267_v48 }
 0x231   :  { %979 = vmatpush1.msra.mxu0 %v2273_v49  ;;  %1050 = vmatpush1.msra.mxu1 %v2275_v50 }
 0x232   :  { %980 = vmatprep.subr.mxu0 %v2284_v52  ;;  %1051 = vmatprep.subr.mxu1 %v2286_v53 }
 0x233   :  { %981 = vmatpush1.msra.mxu0 %v2290_v54  ;;  %1052 = vmatpush1.msra.mxu1 %v3316_v6 }
 0x234   :  { %982 = vmatprep.subr.mxu0 %v3344_v9  ;;  %1053 = vmatprep.subr.mxu1 %v3345_v10 }
 0x235   :  { %983 = vmatpush1.msra.mxu0 %v3346_v11  ;;  %1054 = vmatpush1.msra.mxu1 %v3347_v12 }
 0x236   :  { %984 = vmatprep.subr.mxu0 %v3348_v13  ;;  %1055 = vmatprep.subr.mxu1 %v3349_v14 }
 0x237   :  { %985 = vmatpush1.msra.mxu0 %v3350_v16  ;;  %1056 = vmatpush1.msra.mxu1 %v3351_v17 }
 0x238   :  { %986 = vmatprep.subr.mxu0 %v3352_v18  ;;  %1057 = vmatprep.subr.mxu1 %v3353_v19 }
 0x239   :  { %987 = vmatpush1.msra.mxu0 %v3354_v20  ;;  %1058 = vmatpush1.msra.mxu1 %v3355_v21 }
 0x23a   :  { %988 = vmatprep.subr.mxu0 %v3356_v22  ;;  %1059 = vmatprep.subr.mxu1 %v3357_v23 }
 0x23b   :  { %989 = vmatpush1.msra.mxu0 %v3358_v25  ;;  %1060 = vmatpush1.msra.mxu1 %v3359_v26 }
 0x23c   :  { %990 = vmatprep.subr.mxu0 %v3360_v27  ;;  %1061 = vmatprep.subr.mxu1 %v3361_v28 }
 0x23d   :  { %991 = vmatpush1.msra.mxu0 %v3362_v29  ;;  %1024 = vmatprep.mubr.f32.mxu0 %v3363_v30 }
 0x23e   :  { %1062 = vmatpush1.msra.mxu1 %v3364_v31  ;;  %1095 = vmatprep.mubr.f32.mxu1 %v3363_v30 }
 0x23f   :  { %1139 = vmatprep.subr.mxu0 %v2691_v32  ;;  %1210 = vmatprep.subr.mxu1 %v2694_v34 }
 0x2de   :  { %v847_v35 = vpop.f32.mrf.mxu0  ;;  %v918_v60 = vpop.f32.mrf.mxu1 }
 0x2df   :  { %v923_v24 = vadd.f32 %v847_v35, %v3367_v0  ;;  %v925_v7 = vadd.f32 %v918_v60, %v3370_v4  ;;  %v2714_v4 = vld [vmem:[#allocation4 + $0x1c8] sm:$0xff] }
 0x2e0   :  { %v849_v8 = vpop.f32.mrf.mxu0  ;;  %v920_v42 = vpop.f32.mrf.mxu1 }
 0x2e1   :  { %v927_v57 = vmul.f32 0.5, %v923_v24  ;;  %v924_v63 = vadd.f32 %v849_v8, %v3368_v61  ;;  %v926_v2 = vadd.f32 %v920_v42, %v3369_v55  ;;  %v929_v15 = vmul.f32 0.5, %v925_v7  ;;  %v2717_v7 = vld [vmem:[#allocation4 + $0x1d8] sm:$0xff] }
 0x2e3   :  { %1923 = vtanh.f32 %v927_v57  ;;  %v928_v59 = vmul.f32 0.5, %v924_v63  ;;  %v1887_v63 = vld [vmem:[%s3162_s4 + $0x2] ss:$0 sm:$0xff] }
 0x2e5   :  { %1925 = vtanh.f32 %v928_v59 }
 0x2e6   :  { %1927 = vtanh.f32 %v926_v2  ;;  %v2708_v2 = vld [vmem:[#allocation4 + $0x1e0] sm:$0xff] }
 0x2e7   :  { %1929 = vtanh.f32 %v929_v15 }
 0x2f0   :  { %v1924_v62 = vpop.eup %1923 }
 0x2f1   :  { %v933_v58 = vmul.f32 0.5, %v1924_v62  ;;  %v2723_v62 = vld [vmem:[#allocation4 + $0x1c0] sm:$0xff] }
 0x2f2   :  { %v1926_v51 = vpop.eup %1925 }
 0x2f3   :  { %v936_v1 = vadd.f32 0.5, %v933_v58  ;;  %v934_v33 = vmul.f32 0.5, %v1926_v51  ;;  %v1928_v5 = vpop.eup %1927  ;;  %v2726_v58 = vld [vmem:[#allocation4 + $0x1d0] sm:$0xff]  ;;  %v2729_v51 = vld [vmem:[#allocation4 + $0x1a8] sm:$0xff] }
 0x2f4   :  { %v1930_v42 = vpop.eup %1929 }
 0x2f5   :  { %v937_v35 = vadd.f32 0.5, %v934_v33  ;;  %v941_v0 = vmul.f32 %v1928_v5, %v936_v1  ;;  %v935_v57 = vmul.f32 0.5, %v1930_v42  ;;  %v2732_v1 = vld [vmem:[#allocation4 + $0x1b8] sm:$0xff]  ;;  %v2735_v33 = vld [vmem:[#allocation4 + $0x1a0] sm:$0xff]  ;;  %v2741_v5 = vld [vmem:[#allocation4 + $0x188] sm:$0xff] }
 0x2f6   :  { %v2753_v42 = vld [vmem:[#allocation4 + $0x168] sm:$0xff] }
 0x2f7   :  { %v940_v24 = vmul.f32 %v937_v35, %v2615_v56  ;;  %v938_v61 = vadd.f32 0.5, %v935_v57  ;;  %v2711_v56 = vld [vmem:[#allocation4 + $0x1f0] sm:$0xff]  ;;  %v2744_v35 = vld [vmem:[#allocation4 + $0x198] sm:$0xff] }
 0x2f8   :  { %v2756_v57 = vld [vmem:[#allocation4 + $0x178] sm:$0xff] }
 0x2f9   :  { %v2702_v8 = vadd.f32 %v941_v0, %v940_v24  ;;  %v2747_v0 = vld [vmem:[#allocation4 + $0x180] sm:$0xff]  ;;  %v2750_v24 = vld [vmem:[#allocation4 + $0x190] sm:$0xff]  ;;  %3371 = vst [vmem:[#allocation8_spill] sm:$0xff] %v2756_v57 }
 0x2fb   :  { %1931 = vtanh.f32 %v2702_v8 }
 0x308   :  { %v1932_v60 = vpop.eup %1931 }
 0x309   :  { %v944_v59 = vmul.f32 %v1932_v60, %v938_v61  ;;  %v2759_v61 = vld [vmem:[#allocation4 + $0x160] sm:$0xff]  ;;  %v2762_v60 = vld [vmem:[#allocation4 + $0x170] sm:$0xff] }
 0x30a   :  { %3372 = vst [vmem:[#allocation30_spill] sm:$0xff] %v2759_v61  ;;  %3373 = vst [vmem:[#allocation32_spill] sm:$0xff] %v2762_v60 }
 0x30b   :  { %1025 = vmatmul.mubr.f32.vlgmr.msra.gmra.mxu0 %v944_v59  ;;  %1096 = vmatmul.mubr.f32.vlgmr.msra.gmra.mxu1 %v944_v59  ;;  %v953_v55 = vmul.f32 %v1887_v63, %v944_v59  ;;  %v2765_v63 = vld [vmem:[#allocation4 + $0x148] sm:$0xff]  ;;  %v2768_v59 = vld [vmem:[#allocation4 + $0x158] sm:$0xff] }
 0x30c   :  { %1140 = vmatpush1.msra.mxu0 %v2708_v2  ;;  %1211 = vmatpush1.msra.mxu1 %v2711_v56 }
 0x30d   :  { %1141 = vmatprep.subr.mxu0 %v2714_v4  ;;  %1212 = vmatprep.subr.mxu1 %v2717_v7  ;;  %v2721_v15 = vadd.f32 %v953_v55, %v2629_v3  ;;  %v2738_v3 = vld [vmem:[#allocation4 + $0x1b0] sm:$0xff]  ;;  %v2771_v55 = vld [vmem:[#allocation4 + $0x140] sm:$0xff] }
 0x30e   :  { %1142 = vmatpush1.msra.mxu0 %v2723_v62  ;;  %1213 = vmatpush1.msra.mxu1 %v2726_v58 }
 0x30f   :  { %1143 = vmatprep.subr.mxu0 %v2729_v51  ;;  %1214 = vmatprep.subr.mxu1 %v2732_v1 }
 0x310   :  { %1144 = vmatpush1.msra.mxu0 %v2735_v33  ;;  %1215 = vmatpush1.msra.mxu1 %v2738_v3 }
 0x311   :  { %1145 = vmatprep.subr.mxu0 %v2741_v5  ;;  %1216 = vmatprep.subr.mxu1 %v2744_v35 }
 0x312   :  { %1146 = vmatpush1.msra.mxu0 %v2747_v0  ;;  %1217 = vmatpush1.msra.mxu1 %v2750_v24 }
 0x313   :  { %1147 = vmatprep.subr.mxu0 %v2753_v42  ;;  %1218 = vmatprep.subr.mxu1 %v2756_v57  ;;  %v2774_v57 = vld [vmem:[#allocation4 + $0x150] sm:$0xff] }
 0x314   :  { %1148 = vmatpush1.msra.mxu0 %v2759_v61  ;;  %1219 = vmatpush1.msra.mxu1 %v2762_v60  ;;  %v2777_v61 = vld [vmem:[#allocation4 + $0x128] sm:$0xff]  ;;  %v2780_v60 = vld [vmem:[#allocation4 + $0x138] sm:$0xff] }
 0x315   :  { %1149 = vmatprep.subr.mxu0 %v2765_v63  ;;  %1220 = vmatprep.subr.mxu1 %v2768_v59 }
 0x316   :  { %1150 = vmatpush1.msra.mxu0 %v2771_v55  ;;  %1221 = vmatpush1.msra.mxu1 %v2774_v57 }
 0x317   :  { %1151 = vmatprep.subr.mxu0 %v2777_v61  ;;  %1222 = vmatprep.subr.mxu1 %v2780_v60 }
 0x318   :  { %1152 = vmatpush1.msra.mxu0 %v2228_v36  ;;  %1223 = vmatpush1.msra.mxu1 %v2230_v37 }
 0x319   :  { %1153 = vmatprep.subr.mxu0 %v2234_v38  ;;  %1224 = vmatprep.subr.mxu1 %v2236_v39  ;;  %v3374_v38 = vld [vmem:[#allocation38_spill] sm:$0xff] }
 0x31a   :  { %1154 = vmatpush1.msra.mxu0 %v2242_v40  ;;  %1225 = vmatpush1.msra.mxu1 %v2244_v41 }
 0x31b   :  { %1155 = vmatprep.subr.mxu0 %v2253_v43  ;;  %1226 = vmatprep.subr.mxu1 %v2255_v44  ;;  %v3375_v44 = vld [vmem:[#allocation40_spill] sm:$0xff] }
 0x31c   :  { %1156 = vmatpush1.msra.mxu0 %v2259_v45  ;;  %1227 = vmatpush1.msra.mxu1 %v2261_v46 }
 0x31d   :  { %1157 = vmatprep.subr.mxu0 %v2265_v47  ;;  %1228 = vmatprep.subr.mxu1 %v2267_v48  ;;  %v3376_v47 = vld [vmem:[#allocation41_spill] sm:$0xff] }
 0x31e   :  { %1158 = vmatpush1.msra.mxu0 %v2273_v49  ;;  %1229 = vmatpush1.msra.mxu1 %v2275_v50  ;;  %v3377_v49 = vld [vmem:[#allocation39_spill] sm:$0xff] }
 0x31f   :  { %1159 = vmatprep.subr.mxu0 %v2284_v52  ;;  %1230 = vmatprep.subr.mxu1 %v2286_v53 }
 0x320   :  { %1160 = vmatpush1.msra.mxu0 %v2290_v54  ;;  %1231 = vmatpush1.msra.mxu1 %v3316_v6 }
 0x321   :  { %1161 = vmatprep.subr.mxu0 %v3344_v9  ;;  %1232 = vmatprep.subr.mxu1 %v3345_v10 }
 0x322   :  { %1162 = vmatpush1.msra.mxu0 %v3346_v11  ;;  %1233 = vmatpush1.msra.mxu1 %v3347_v12 }
 0x323   :  { %1163 = vmatprep.subr.mxu0 %v3348_v13  ;;  %1234 = vmatprep.subr.mxu1 %v3349_v14 }
 0x324   :  { %1164 = vmatpush1.msra.mxu0 %v3350_v16  ;;  %1235 = vmatpush1.msra.mxu1 %v3351_v17 }
 0x325   :  { %1165 = vmatprep.subr.mxu0 %v3352_v18  ;;  %1236 = vmatprep.subr.mxu1 %v3353_v19 }
 0x326   :  { %1166 = vmatpush1.msra.mxu0 %v3354_v20  ;;  %1237 = vmatpush1.msra.mxu1 %v3355_v21  ;;  %v1889_v21 = vld [vmem:[%s3162_s4 + $0x3] ss:$0 sm:$0xff] }
 0x327   :  { %1167 = vmatprep.subr.mxu0 %v3356_v22  ;;  %1238 = vmatprep.subr.mxu1 %v3357_v23 }
 0x328   :  { %1168 = vmatpush1.msra.mxu0 %v3358_v25  ;;  %1239 = vmatpush1.msra.mxu1 %v3359_v26  ;;  %v3378_v26 = vld [vmem:[#allocation8_spill] sm:$0xff] }
 0x329   :  { %1169 = vmatprep.subr.mxu0 %v3360_v27  ;;  %1240 = vmatprep.subr.mxu1 %v3361_v28  ;;  %v3379_v27 = vld [vmem:[#allocation30_spill] sm:$0xff]  ;;  %v3380_v28 = vld [vmem:[#allocation32_spill] sm:$0xff] }
 0x32a   :  { %1170 = vmatpush1.msra.mxu0 %v3362_v29  ;;  %1203 = vmatprep.mubr.f32.mxu0 %v3363_v30  ;;  %v2863_v29 = vld [vmem:[#allocation4 + $0x120] sm:$0xff] }
 0x32b   :  { %1241 = vmatpush1.msra.mxu1 %v3364_v31  ;;  %1274 = vmatprep.mubr.f32.mxu1 %v3363_v30  ;;  %v2866_v31 = vld [vmem:[#allocation4 + $0x130] sm:$0xff] }
 0x32c   :  { %1318 = vmatprep.subr.mxu0 %v2691_v32  ;;  %1389 = vmatprep.subr.mxu1 %v2694_v34 }
 0x3cb   :  { %v1026_v36 = vpop.f32.mrf.mxu0  ;;  %v1097_v37 = vpop.f32.mrf.mxu1 }
 0x3cc   :  { %v1102_v39 = vadd.f32 %v1026_v36, %v3374_v38  ;;  %v1104_v50 = vadd.f32 %v1097_v37, %v3377_v49  ;;  %v2875_v36 = vld [vmem:[#allocation4 + $0x100] sm:$0xff]  ;;  %v2878_v37 = vld [vmem:[#allocation4 + $0x110] sm:$0xff]  ;;  %v2881_v38 = vld [vmem:[#allocation4 + $0xe8] sm:$0xff] }
 0x3cd   :  { %v1028_v40 = vpop.f32.mrf.mxu0  ;;  %v1099_v41 = vpop.f32.mrf.mxu1  ;;  %v2911_v49 = vld [vmem:[#allocation4 + $0xa0] sm:$0xff] }
 0x3ce   :  { %v1106_v43 = vmul.f32 0.5, %v1102_v39  ;;  %v1103_v45 = vadd.f32 %v1028_v40, %v3375_v44  ;;  %v1105_v48 = vadd.f32 %v1099_v41, %v3376_v47  ;;  %v1108_v52 = vmul.f32 0.5, %v1104_v50  ;;  %v2884_v39 = vld [vmem:[#allocation4 + $0xf8] sm:$0xff]  ;;  %v2887_v40 = vld [vmem:[#allocation4 + $0xe0] sm:$0xff]  ;;  %v2890_v41 = vld [vmem:[#allocation4 + $0xf0] sm:$0xff] }
 0x3cf   :  { %v2896_v44 = vld [vmem:[#allocation4 + $0xd8] sm:$0xff]  ;;  %v2905_v47 = vld [vmem:[#allocation4 + $0xa8] sm:$0xff]  ;;  %v2914_v50 = vld [vmem:[#allocation4 + $0xb0] sm:$0xff] }
 0x3d0   :  { %1933 = vtanh.f32 %v1106_v43  ;;  %v1107_v46 = vmul.f32 0.5, %v1103_v45  ;;  %v2893_v43 = vld [vmem:[#allocation4 + $0xc8] sm:$0xff]  ;;  %v2899_v45 = vld [vmem:[#allocation4 + $0xc0] sm:$0xff] }
 0x3d2   :  { %1935 = vtanh.f32 %v1107_v46  ;;  %v2902_v46 = vld [vmem:[#allocation4 + $0xd0] sm:$0xff] }
 0x3d3   :  { %1937 = vtanh.f32 %v1105_v48  ;;  %v2908_v48 = vld [vmem:[#allocation4 + $0xb8] sm:$0xff] }
 0x3d4   :  { %1939 = vtanh.f32 %v1108_v52  ;;  %v2917_v52 = vld [vmem:[#allocation4 + $0x88] sm:$0xff] }
 0x3d5   :  { %3381 = vst [vmem:[#allocation33_spill] sm:$0xff] %v2917_v52 }
 0x3dd   :  { %v1934_v53 = vpop.eup %1933 }
 0x3de   :  { %v1112_v54 = vmul.f32 0.5, %v1934_v53  ;;  %v2920_v53 = vld [vmem:[#allocation4 + $0x98] sm:$0xff] }
 0x3df   :  { %v1936_v6 = vpop.eup %1935  ;;  %3382 = vst [vmem:[#allocation31_spill] sm:$0xff] %v2920_v53 }
 0x3e0   :  { %v1115_v9 = vadd.f32 0.5, %v1112_v54  ;;  %v1113_v10 = vmul.f32 0.5, %v1936_v6  ;;  %v1938_v11 = vpop.eup %1937  ;;  %v2923_v54 = vld [vmem:[#allocation4 + $0x80] sm:$0xff]  ;;  %v2926_v6 = vld [vmem:[#allocation4 + $0x90] sm:$0xff] }
 0x3e1   :  { %v1940_v17 = vpop.eup %1939  ;;  %3383 = vst [vmem:[#allocation10_spill] sm:$0xff] %v2923_v54  ;;  %3384 = vst [vmem:[#allocation11_spill] sm:$0xff] %v2926_v6 }
 0x3e2   :  { %v1116_v12 = vadd.f32 0.5, %v1113_v10  ;;  %v1120_v13 = vmul.f32 %v1938_v11, %v1115_v9  ;;  %v1114_v18 = vmul.f32 0.5, %v1940_v17  ;;  %v2929_v9 = vld [vmem:[#allocation4 + $0x68] sm:$0xff]  ;;  %v2932_v10 = vld [vmem:[#allocation4 + $0x78] sm:$0xff]  ;;  %v2935_v11 = vld [vmem:[#allocation4 + $0x60] sm:$0xff] }
 0x3e3   :  { %3385 = vst [vmem:[#allocation12_spill] sm:$0xff] %v2929_v9  ;;  %3386 = vst [vmem:[#allocation13_spill] sm:$0xff] %v2932_v10  ;;  %v2947_v17 = vld [vmem:[#allocation4 + $0x40] sm:$0xff] }
 0x3e4   :  { %v1119_v14 = vmul.f32 %v1116_v12, %v2702_v8  ;;  %v1117_v19 = vadd.f32 0.5, %v1114_v18  ;;  %v2869_v8 = vld [vmem:[#allocation4 + $0x108] sm:$0xff]  ;;  %3387 = vst [vmem:[#allocation14_spill] sm:$0xff] %v2935_v11  ;;  %v2938_v12 = vld [vmem:[#allocation4 + $0x70] sm:$0xff]  ;;  %3391 = vst [vmem:[#allocation18_spill] sm:$0xff] %v2947_v17 }
 0x3e5   :  { %3388 = vst [vmem:[#allocation15_spill] sm:$0xff] %v2938_v12  ;;  %v2950_v18 = vld [vmem:[#allocation4 + $0x50] sm:$0xff] }
 0x3e6   :  { %v2830_v16 = vadd.f32 %v1120_v13, %v1119_v14  ;;  %v2941_v13 = vld [vmem:[#allocation4 + $0x48] sm:$0xff]  ;;  %v2944_v14 = vld [vmem:[#allocation4 + $0x58] sm:$0xff]  ;;  %3392 = vst [vmem:[#allocation19_spill] sm:$0xff] %v2950_v18 }
 0x3e7   :  { %3389 = vst [vmem:[#allocation16_spill] sm:$0xff] %v2941_v13  ;;  %3390 = vst [vmem:[#allocation17_spill] sm:$0xff] %v2944_v14 }
 0x3e8   :  { %1941 = vtanh.f32 %v2830_v16 }
 0x3f5   :  { %v1942_v20 = vpop.eup %1941 }
 0x3f6   :  { %v1123_v22 = vmul.f32 %v1942_v20, %v1117_v19  ;;  %v2953_v19 = vld [vmem:[#allocation4 + $0x28] sm:$0xff]  ;;  %v2956_v20 = vld [vmem:[#allocation4 + $0x38] sm:$0xff] }
 0x3f7   :  { %3393 = vst [vmem:[#allocation20_spill] sm:$0xff] %v2953_v19  ;;  %3394 = vst [vmem:[#allocation21_spill] sm:$0xff] %v2956_v20 }
 0x3f8   :  { %1204 = vmatmul.mubr.f32.vlgmr.msra.gmra.mxu0 %v1123_v22  ;;  %1275 = vmatmul.mubr.f32.vlgmr.msra.gmra.mxu1 %v1123_v22  ;;  %v1132_v23 = vmul.f32 %v1889_v21, %v1123_v22  ;;  %v2959_v21 = vld [vmem:[#allocation4 + $0x20] sm:$0xff]  ;;  %v2962_v22 = vld [vmem:[#allocation4 + $0x30] sm:$0xff] }
 0x3f9   :  { %1319 = vmatpush1.msra.mxu0 %v2708_v2  ;;  %1390 = vmatpush1.msra.mxu1 %v2711_v56  ;;  %3395 = vst [vmem:[#allocation22_spill] sm:$0xff] %v2959_v21  ;;  %3396 = vst [vmem:[#allocation23_spill] sm:$0xff] %v2962_v22 }
 0x3fa   :  { %1320 = vmatprep.subr.mxu0 %v2714_v4  ;;  %1391 = vmatprep.subr.mxu1 %v2717_v7  ;;  %v2841_v25 = vadd.f32 %v1132_v23, %v2721_v15  ;;  %v2872_v15 = vld [vmem:[#allocation4 + $0x118] sm:$0xff]  ;;  %v2965_v23 = vld [vmem:[#allocation4 + $0x8] sm:$0xff] }
 0x3fb   :  { %1321 = vmatpush1.msra.mxu0 %v2723_v62  ;;  %1392 = vmatpush1.msra.mxu1 %v2726_v58  ;;  %3397 = vst [vmem:[#allocation24_spill] sm:$0xff] %v2965_v23 }
 0x3fc   :  { %1322 = vmatprep.subr.mxu0 %v2729_v51  ;;  %1393 = vmatprep.subr.mxu1 %v2732_v1 }
 0x3fd   :  { %1323 = vmatpush1.msra.mxu0 %v2735_v33  ;;  %1394 = vmatpush1.msra.mxu1 %v2738_v3 }
 0x3fe   :  { %1324 = vmatprep.subr.mxu0 %v2741_v5  ;;  %1395 = vmatprep.subr.mxu1 %v2744_v35 }
 0x3ff   :  { %1325 = vmatpush1.msra.mxu0 %v2747_v0  ;;  %1396 = vmatpush1.msra.mxu1 %v2750_v24 }
 0x400   :  { %1326 = vmatprep.subr.mxu0 %v2753_v42  ;;  %1397 = vmatprep.subr.mxu1 %v3378_v26 }
 0x401   :  { %1327 = vmatpush1.msra.mxu0 %v3379_v27  ;;  %1398 = vmatpush1.msra.mxu1 %v3380_v28 }
 0x402   :  { %1328 = vmatprep.subr.mxu0 %v2765_v63  ;;  %1399 = vmatprep.subr.mxu1 %v2768_v59 }
 0x403   :  { %1329 = vmatpush1.msra.mxu0 %v2771_v55  ;;  %1400 = vmatpush1.msra.mxu1 %v2774_v57 }
 0x404   :  { %1330 = vmatprep.subr.mxu0 %v2777_v61  ;;  %1401 = vmatprep.subr.mxu1 %v2780_v60 }
 0x405   :  { %1331 = vmatpush1.msra.mxu0 %v2863_v29  ;;  %1402 = vmatpush1.msra.mxu1 %v2866_v31 }
 0x406   :  { %1332 = vmatprep.subr.mxu0 %v2869_v8  ;;  %1403 = vmatprep.subr.mxu1 %v2872_v15 }
 0x407   :  { %1333 = vmatpush1.msra.mxu0 %v2875_v36  ;;  %1404 = vmatpush1.msra.mxu1 %v2878_v37 }
 0x408   :  { %1334 = vmatprep.subr.mxu0 %v2881_v38  ;;  %1405 = vmatprep.subr.mxu1 %v2884_v39 }
 0x409   :  { %1335 = vmatpush1.msra.mxu0 %v2887_v40  ;;  %1406 = vmatpush1.msra.mxu1 %v2890_v41 }
 0x40a   :  { %1336 = vmatprep.subr.mxu0 %v2893_v43  ;;  %1407 = vmatprep.subr.mxu1 %v2896_v44 }
 0x40b   :  { %1337 = vmatpush1.msra.mxu0 %v2899_v45  ;;  %1408 = vmatpush1.msra.mxu1 %v2902_v46 }
 0x40c   :  { %1338 = vmatprep.subr.mxu0 %v2905_v47  ;;  %1409 = vmatprep.subr.mxu1 %v2908_v48 }
 0x40d   :  { %1339 = vmatpush1.msra.mxu0 %v2911_v49  ;;  %1410 = vmatpush1.msra.mxu1 %v2914_v50 }
 0x40e   :  { %1340 = vmatprep.subr.mxu0 %v2917_v52  ;;  %1411 = vmatprep.subr.mxu1 %v2920_v53 }
 0x40f   :  { %1341 = vmatpush1.msra.mxu0 %v2923_v54  ;;  %1412 = vmatpush1.msra.mxu1 %v2926_v6 }
 0x410   :  { %1342 = vmatprep.subr.mxu0 %v2929_v9  ;;  %1413 = vmatprep.subr.mxu1 %v2932_v10  ;;  %v3403_v10 = vld [vmem:[#allocation45_spill] sm:$0xff] }
 0x411   :  { %1343 = vmatpush1.msra.mxu0 %v2935_v11  ;;  %1414 = vmatpush1.msra.mxu1 %v2938_v12 }
 0x412   :  { %1344 = vmatprep.subr.mxu0 %v2941_v13  ;;  %1415 = vmatprep.subr.mxu1 %v2944_v14 }
 0x413   :  { %1345 = vmatpush1.msra.mxu0 %v2947_v17  ;;  %1416 = vmatpush1.msra.mxu1 %v2950_v18  ;;  %v2968_v18 = vld [vmem:[#allocation4 + $0x18] sm:$0xff] }
 0x414   :  { %1346 = vmatprep.subr.mxu0 %v2953_v19  ;;  %1417 = vmatprep.subr.mxu1 %v2956_v20  ;;  %3398 = vst [vmem:[#allocation25_spill] sm:$0xff] %v2968_v18  ;;  %v2971_v19 = vld [vmem:[#allocation4] sm:$0xff]  ;;  %v2975_v20 = vld [vmem:[#allocation4 + $0x10] sm:$0xff] }
 0x415   :  { %1347 = vmatpush1.msra.mxu0 %v2959_v21  ;;  %1418 = vmatpush1.msra.mxu1 %v2962_v22  ;;  %3399 = vst [vmem:[#allocation26_spill] sm:$0xff] %v2971_v19  ;;  %3400 = vst [vmem:[#allocation27_spill] sm:$0xff] %v2975_v20  ;;  %v3401_v21 = vld [vmem:[#allocation42_spill] sm:$0xff] }
 0x416   :  { %1348 = vmatprep.subr.mxu0 %v2965_v23  ;;  %1419 = vmatprep.subr.mxu1 %v2968_v18 }
 0x417   :  { %1349 = vmatpush1.msra.mxu0 %v2971_v19  ;;  %1382 = vmatprep.mubr.f32.mxu0 %v3363_v30  ;;  %v3402_v19 = vld [vmem:[#allocation44_spill] sm:$0xff] }
 0x418   :  { %1420 = vmatpush1.msra.mxu1 %v2975_v20  ;;  %1453 = vmatprep.mubr.f32.mxu1 %v3363_v30  ;;  %v3404_v20 = vld [vmem:[#allocation43_spill] sm:$0xff] }
 0x419   :  { %1497 = vmatprep.subr.mxu0 %v2691_v32  ;;  %1568 = vmatprep.subr.mxu1 %v2694_v34 }
 0x4b8   :  { %v1205_v23 = vpop.f32.mrf.mxu0  ;;  %v1276_v22 = vpop.f32.mrf.mxu1 }
 0x4b9   :  { %v1281_v18 = vadd.f32 %v1205_v23, %v3401_v21  ;;  %v1283_v30 = vadd.f32 %v1276_v22, %v3404_v20  ;;  %v3412_v20 = vld [vmem:[#allocation15_spill] sm:$0xff]  ;;  %v3413_v22 = vld [vmem:[#allocation16_spill] sm:$0xff] }
 0x4ba   :  { %v1207_v17 = vpop.f32.mrf.mxu0  ;;  %v1278_v14 = vpop.f32.mrf.mxu1 }
 0x4bb   :  { %v1285_v13 = vmul.f32 0.5, %v1281_v18  ;;  %v1282_v12 = vadd.f32 %v1207_v17, %v3402_v19  ;;  %v1284_v9 = vadd.f32 %v1278_v14, %v3403_v10  ;;  %v1287_v32 = vmul.f32 0.5, %v1283_v30  ;;  %v1891_v30 = vld [vmem:[%s3162_s4 + $0x4] ss:$0 sm:$0xff]  ;;  %v3410_v14 = vld [vmem:[#allocation13_spill] sm:$0xff]  ;;  %v3411_v19 = vld [vmem:[#allocation14_spill] sm:$0xff] }
 0x4bd   :  { %1943 = vtanh.f32 %v1285_v13  ;;  %v1286_v11 = vmul.f32 0.5, %v1282_v12 }
 0x4bf   :  { %1945 = vtanh.f32 %v1286_v11 }
 0x4c0   :  { %1947 = vtanh.f32 %v1284_v9 }
 0x4c1   :  { %1949 = vtanh.f32 %v1287_v32 }
 0x4ca   :  { %v1944_v6 = vpop.eup %1943 }
 0x4cb   :  { %v1291_v34 = vmul.f32 0.5, %v1944_v6  ;;  %v3409_v6 = vld [vmem:[#allocation12_spill] sm:$0xff] }
 0x4cc   :  { %v1946_v54 = vpop.eup %1945 }
 0x4cd   :  { %v1294_v53 = vadd.f32 0.5, %v1291_v34  ;;  %v1292_v21 = vmul.f32 0.5, %v1946_v54  ;;  %v1948_v23 = vpop.eup %1947  ;;  %v3408_v54 = vld [vmem:[#allocation11_spill] sm:$0xff] }
 0x4ce   :  { %v1950_v10 = vpop.eup %1949 }
 0x4cf   :  { %v1295_v52 = vadd.f32 0.5, %v1292_v21  ;;  %v1299_v18 = vmul.f32 %v1948_v23, %v1294_v53  ;;  %v1293_v9 = vmul.f32 0.5, %v1950_v10  ;;  %v3407_v53 = vld [vmem:[#allocation10_spill] sm:$0xff]  ;;  %v3414_v21 = vld [vmem:[#allocation17_spill] sm:$0xff] }
 0x4d0   :  { %v3415_v23 = vld [vmem:[#allocation18_spill] sm:$0xff]  ;;  %v3418_v10 = vld [vmem:[#allocation21_spill] sm:$0xff] }
 0x4d1   :  { %v1298_v17 = vmul.f32 %v1295_v52, %v2830_v16  ;;  %v1296_v11 = vadd.f32 0.5, %v1293_v9  ;;  %v3406_v52 = vld [vmem:[#allocation31_spill] sm:$0xff]  ;;  %v3419_v9 = vld [vmem:[#allocation22_spill] sm:$0xff] }
 0x4d3   :  { %v2986_v13 = vadd.f32 %v1299_v18, %v1298_v17  ;;  %v3416_v18 = vld [vmem:[#allocation19_spill] sm:$0xff]  ;;  %v3417_v17 = vld [vmem:[#allocation20_spill] sm:$0xff] }
 0x4d5   :  { %1951 = vtanh.f32 %v2986_v13 }
 0x4e2   :  { %v1952_v12 = vpop.eup %1951 }
 0x4e3   :  { %v1302_v34 = vmul.f32 %v1952_v12, %v1296_v11  ;;  %v3420_v11 = vld [vmem:[#allocation23_spill] sm:$0xff]  ;;  %v3421_v12 = vld [vmem:[#allocation24_spill] sm:$0xff] }
 0x4e5   :  { %1383 = vmatmul.mubr.f32.vlgmr.msra.gmra.mxu0 %v1302_v34  ;;  %1454 = vmatmul.mubr.f32.vlgmr.msra.gmra.mxu1 %v1302_v34  ;;  %v1311_v32 = vmul.f32 %v1891_v30, %v1302_v34  ;;  %v3422_v30 = vld [vmem:[#allocation25_spill] sm:$0xff]  ;;  %v3423_v34 = vld [vmem:[#allocation26_spill] sm:$0xff] }
 0x4e6   :  { %1498 = vmatpush1.msra.mxu0 %v2708_v2  ;;  %1569 = vmatpush1.msra.mxu1 %v2711_v56 }
 0x4e7   :  { %1499 = vmatprep.subr.mxu0 %v2714_v4  ;;  %1570 = vmatprep.subr.mxu1 %v2717_v7  ;;  %v2997_v16 = vadd.f32 %v1311_v32, %v2841_v25  ;;  %v3405_v25 = vld [vmem:[#allocation33_spill] sm:$0xff]  ;;  %v3424_v32 = vmov 0.0  }
 0x4e8   :  { %1500 = vmatpush1.msra.mxu0 %v2723_v62  ;;  %1571 = vmatpush1.msra.mxu1 %v2726_v58 }
 0x4e9   :  { %1501 = vmatprep.subr.mxu0 %v2729_v51  ;;  %1572 = vmatprep.subr.mxu1 %v2732_v1 }
 0x4ea   :  { %1502 = vmatpush1.msra.mxu0 %v2735_v33  ;;  %1573 = vmatpush1.msra.mxu1 %v2738_v3 }
 0x4eb   :  { %1503 = vmatprep.subr.mxu0 %v2741_v5  ;;  %1574 = vmatprep.subr.mxu1 %v2744_v35 }
 0x4ec   :  { %1504 = vmatpush1.msra.mxu0 %v2747_v0  ;;  %1575 = vmatpush1.msra.mxu1 %v2750_v24 }
 0x4ed   :  { %1505 = vmatprep.subr.mxu0 %v2753_v42  ;;  %1576 = vmatprep.subr.mxu1 %v3378_v26 }
 0x4ee   :  { %1506 = vmatpush1.msra.mxu0 %v3379_v27  ;;  %1577 = vmatpush1.msra.mxu1 %v3380_v28 }
 0x4ef   :  { %1507 = vmatprep.subr.mxu0 %v2765_v63  ;;  %1578 = vmatprep.subr.mxu1 %v2768_v59 }
 0x4f0   :  { %1508 = vmatpush1.msra.mxu0 %v2771_v55  ;;  %1579 = vmatpush1.msra.mxu1 %v2774_v57 }
 0x4f1   :  { %1509 = vmatprep.subr.mxu0 %v2777_v61  ;;  %1580 = vmatprep.subr.mxu1 %v2780_v60 }
 0x4f2   :  { %1510 = vmatpush1.msra.mxu0 %v2863_v29  ;;  %1581 = vmatpush1.msra.mxu1 %v2866_v31 }
 0x4f3   :  { %1511 = vmatprep.subr.mxu0 %v2869_v8  ;;  %1582 = vmatprep.subr.mxu1 %v2872_v15 }
 0x4f4   :  { %1512 = vmatpush1.msra.mxu0 %v2875_v36  ;;  %1583 = vmatpush1.msra.mxu1 %v2878_v37 }
 0x4f5   :  { %1513 = vmatprep.subr.mxu0 %v2881_v38  ;;  %1584 = vmatprep.subr.mxu1 %v2884_v39 }
 0x4f6   :  { %1514 = vmatpush1.msra.mxu0 %v2887_v40  ;;  %1585 = vmatpush1.msra.mxu1 %v2890_v41 }
 0x4f7   :  { %1515 = vmatprep.subr.mxu0 %v2893_v43  ;;  %1586 = vmatprep.subr.mxu1 %v2896_v44 }
 0x4f8   :  { %1516 = vmatpush1.msra.mxu0 %v2899_v45  ;;  %1587 = vmatpush1.msra.mxu1 %v2902_v46 }
 0x4f9   :  { %1517 = vmatprep.subr.mxu0 %v2905_v47  ;;  %1588 = vmatprep.subr.mxu1 %v2908_v48 }
 0x4fa   :  { %1518 = vmatpush1.msra.mxu0 %v2911_v49  ;;  %1589 = vmatpush1.msra.mxu1 %v2914_v50 }
 0x4fb   :  { %1519 = vmatprep.subr.mxu0 %v3405_v25  ;;  %1590 = vmatprep.subr.mxu1 %v3406_v52 }
 0x4fc   :  { %1520 = vmatpush1.msra.mxu0 %v3407_v53  ;;  %1591 = vmatpush1.msra.mxu1 %v3408_v54 }
 0x4fd   :  { %1521 = vmatprep.subr.mxu0 %v3409_v6  ;;  %1592 = vmatprep.subr.mxu1 %v3410_v14  ;;  %v3430_v14 = vld [vmem:[#allocation49_spill] sm:$0xff] }
 0x4fe   :  { %1522 = vmatpush1.msra.mxu0 %v3411_v19  ;;  %1593 = vmatpush1.msra.mxu1 %v3412_v20 }
 0x4ff   :  { %1523 = vmatprep.subr.mxu0 %v3413_v22  ;;  %1594 = vmatprep.subr.mxu1 %v3414_v21  ;;  %v3425_v21 = vld [vmem:[#allocation27_spill] sm:$0xff] }
 0x500   :  { %1524 = vmatpush1.msra.mxu0 %v3415_v23  ;;  %1595 = vmatpush1.msra.mxu1 %v3416_v18  ;;  %v3426_v18 = vld [vmem:[#allocation9_spill] sm:$0xff]  ;;  %v3428_v23 = vld [vmem:[#allocation46_spill] sm:$0xff] }
 0x501   :  { %1525 = vmatprep.subr.mxu0 %v3417_v17  ;;  %1596 = vmatprep.subr.mxu1 %v3418_v10  ;;  %v3427_v17 = vld [vmem:[#allocation7_spill] sm:$0xff] }
 0x502   :  { %1526 = vmatpush1.msra.mxu0 %v3419_v9  ;;  %1597 = vmatpush1.msra.mxu1 %v3420_v11 }
 0x503   :  { %1527 = vmatprep.subr.mxu0 %v3421_v12  ;;  %1598 = vmatprep.subr.mxu1 %v3422_v30  ;;  %v3429_v30 = vld [vmem:[#allocation48_spill] sm:$0xff] }
 0x504   :  { %1528 = vmatpush1.msra.mxu0 %v3423_v34  ;;  %1561 = vmatprep.mubr.f32.mxu0 %v3424_v32 }
 0x505   :  { %1599 = vmatpush1.msra.mxu1 %v3425_v21  ;;  %1632 = vmatprep.mubr.f32.mxu1 %v3424_v32  ;;  %v3431_v21 = vld [vmem:[#allocation47_spill] sm:$0xff] }
 0x506   :  { %1676 = vmatprep.subr.mxu0 %v3426_v18  ;;  %1747 = vmatprep.subr.mxu1 %v3427_v17 }
 0x5a5   :  { %v1384_v10 = vpop.f32.mrf.mxu0  ;;  %v1455_v9 = vpop.f32.mrf.mxu1 }
 0x5a6   :  { %v1460_v11 = vadd.f32 %v1384_v10, %v3428_v23  ;;  %v1462_v32 = vadd.f32 %v1455_v9, %v3431_v21 }
 0x5a7   :  { %v1386_v22 = vpop.f32.mrf.mxu0  ;;  %v1457_v12 = vpop.f32.mrf.mxu1 }
 0x5a8   :  { %v1464_v20 = vmul.f32 0.5, %v1460_v11  ;;  %v1461_v19 = vadd.f32 %v1386_v22, %v3429_v30  ;;  %v1463_v6 = vadd.f32 %v1457_v12, %v3430_v14  ;;  %v1466_v18 = vmul.f32 0.5, %v1462_v32 }
 0x5aa   :  { %1953 = vtanh.f32 %v1464_v20  ;;  %v1465_v34 = vmul.f32 0.5, %v1461_v19 }
 0x5ac   :  { %1955 = vtanh.f32 %v1465_v34 }
 0x5ad   :  { %1957 = vtanh.f32 %v1463_v6 }
 0x5ae   :  { %1959 = vtanh.f32 %v1466_v18 }
 0x5b7   :  { %v1954_v54 = vpop.eup %1953 }
 0x5b8   :  { %v1470_v17 = vmul.f32 0.5, %v1954_v54  ;;  %v1893_v54 = vld [vmem:[%s3162_s4 + $0x5] ss:$0 sm:$0xff] }
 0x5b9   :  { %v1956_v53 = vpop.eup %1955 }
 0x5ba   :  { %v1473_v52 = vadd.f32 0.5, %v1470_v17  ;;  %v1471_v23 = vmul.f32 0.5, %v1956_v53  ;;  %v1958_v10 = vpop.eup %1957  ;;  %v1895_v17 = vld [vmem:[%s3162_s4 + $0x6] ss:$0 sm:$0xff] }
 0x5bb   :  { %v1960_v14 = vpop.eup %1959 }
 0x5bc   :  { %v1474_v25 = vadd.f32 0.5, %v1471_v23  ;;  %v1478_v11 = vmul.f32 %v1958_v10, %v1473_v52  ;;  %v1472_v6 = vmul.f32 0.5, %v1960_v14 }
 0x5be   :  { %v1477_v22 = vmul.f32 %v1474_v25, %v2986_v13  ;;  %v1475_v19 = vadd.f32 0.5, %v1472_v6  ;;  %v3457_v6 = vld [vmem:[#allocation54_spill] sm:$0xff] }
 0x5c0   :  { %v3066_v20 = vadd.f32 %v1478_v11, %v1477_v22 }
 0x5c2   :  { %1961 = vtanh.f32 %v3066_v20 }
 0x5cf   :  { %v1962_v21 = vpop.eup %1961 }
 0x5d0   :  { %v1481_v9 = vmul.f32 %v1962_v21, %v1475_v19 }
 0x5d2   :  { %1562 = vmatmul.mubr.f32.vlgmr.msra.gmra.mxu0 %v1481_v9  ;;  %1633 = vmatmul.mubr.f32.vlgmr.msra.gmra.mxu1 %v1481_v9  ;;  %v1490_v53 = vmul.f32 %v1893_v54, %v1481_v9  ;;  %v3458_v9 = vld [vmem:[#allocation56_spill] sm:$0xff] }
 0x5d3   :  { %1677 = vmatpush1.msra.mxu0 %v2708_v2  ;;  %1748 = vmatpush1.msra.mxu1 %v2711_v56  ;;  %v3432_v2 = vld [vmem:[#allocation33_spill] sm:$0xff]  ;;  %v3433_v56 = vld [vmem:[#allocation31_spill] sm:$0xff] }
 0x5d4   :  { %1678 = vmatprep.subr.mxu0 %v2714_v4  ;;  %1749 = vmatprep.subr.mxu1 %v2717_v7  ;;  %v3077_v13 = vadd.f32 %v1490_v53, %v2997_v16  ;;  %v3434_v4 = vld [vmem:[#allocation10_spill] sm:$0xff]  ;;  %v3435_v7 = vld [vmem:[#allocation11_spill] sm:$0xff] }
 0x5d5   :  { %1679 = vmatpush1.msra.mxu0 %v2723_v62  ;;  %1750 = vmatpush1.msra.mxu1 %v2726_v58  ;;  %v3436_v62 = vld [vmem:[#allocation12_spill] sm:$0xff]  ;;  %v3437_v58 = vld [vmem:[#allocation13_spill] sm:$0xff] }
 0x5d6   :  { %1680 = vmatprep.subr.mxu0 %v2729_v51  ;;  %1751 = vmatprep.subr.mxu1 %v2732_v1  ;;  %v3438_v51 = vld [vmem:[#allocation14_spill] sm:$0xff]  ;;  %v3439_v1 = vld [vmem:[#allocation15_spill] sm:$0xff] }
 0x5d7   :  { %1681 = vmatpush1.msra.mxu0 %v2735_v33  ;;  %1752 = vmatpush1.msra.mxu1 %v2738_v3  ;;  %v3440_v33 = vld [vmem:[#allocation16_spill] sm:$0xff]  ;;  %v3441_v3 = vld [vmem:[#allocation17_spill] sm:$0xff] }
 0x5d8   :  { %1682 = vmatprep.subr.mxu0 %v2741_v5  ;;  %1753 = vmatprep.subr.mxu1 %v2744_v35  ;;  %v3442_v5 = vld [vmem:[#allocation18_spill] sm:$0xff]  ;;  %v3443_v35 = vld [vmem:[#allocation19_spill] sm:$0xff] }
 0x5d9   :  { %1683 = vmatpush1.msra.mxu0 %v2747_v0  ;;  %1754 = vmatpush1.msra.mxu1 %v2750_v24  ;;  %v3444_v0 = vld [vmem:[#allocation20_spill] sm:$0xff]  ;;  %v3445_v24 = vld [vmem:[#allocation21_spill] sm:$0xff] }
 0x5da   :  { %1684 = vmatprep.subr.mxu0 %v2753_v42  ;;  %1755 = vmatprep.subr.mxu1 %v3378_v26  ;;  %v3446_v42 = vld [vmem:[#allocation22_spill] sm:$0xff] }
 0x5db   :  { %1685 = vmatpush1.msra.mxu0 %v3379_v27  ;;  %1756 = vmatpush1.msra.mxu1 %v3380_v28  ;;  %v3453_v28 = vld [vmem:[#allocation50_spill] sm:$0xff] }
 0x5dc   :  { %1686 = vmatprep.subr.mxu0 %v2765_v63  ;;  %1757 = vmatprep.subr.mxu1 %v2768_v59  ;;  %v3450_v63 = vld [vmem:[#allocation26_spill] sm:$0xff]  ;;  %v3451_v59 = vmov 0.0  }
 0x5dd   :  { %1687 = vmatpush1.msra.mxu0 %v2771_v55  ;;  %1758 = vmatpush1.msra.mxu1 %v2774_v57  ;;  %v3447_v57 = vld [vmem:[#allocation23_spill] sm:$0xff] }
 0x5de   :  { %1688 = vmatprep.subr.mxu0 %v2777_v61  ;;  %1759 = vmatprep.subr.mxu1 %v2780_v60  ;;  %v3448_v61 = vld [vmem:[#allocation24_spill] sm:$0xff]  ;;  %v3449_v60 = vld [vmem:[#allocation25_spill] sm:$0xff]  ;;  %v3452_v55 = vld [vmem:[#allocation27_spill] sm:$0xff] }
 0x5df   :  { %1689 = vmatpush1.msra.mxu0 %v2863_v29  ;;  %1760 = vmatpush1.msra.mxu1 %v2866_v31 }
 0x5e0   :  { %1690 = vmatprep.subr.mxu0 %v2869_v8  ;;  %1761 = vmatprep.subr.mxu1 %v2872_v15 }
 0x5e1   :  { %1691 = vmatpush1.msra.mxu0 %v2875_v36  ;;  %1762 = vmatpush1.msra.mxu1 %v2878_v37  ;;  %v3454_v36 = vld [vmem:[#allocation52_spill] sm:$0xff] }
 0x5e2   :  { %1692 = vmatprep.subr.mxu0 %v2881_v38  ;;  %1763 = vmatprep.subr.mxu1 %v2884_v39  ;;  %v3455_v39 = vld [vmem:[#allocation53_spill] sm:$0xff] }
 0x5e3   :  { %1693 = vmatpush1.msra.mxu0 %v2887_v40  ;;  %1764 = vmatpush1.msra.mxu1 %v2890_v41  ;;  %v3456_v41 = vld [vmem:[#allocation51_spill] sm:$0xff] }
 0x5e4   :  { %1694 = vmatprep.subr.mxu0 %v2893_v43  ;;  %1765 = vmatprep.subr.mxu1 %v2896_v44 }
 0x5e5   :  { %1695 = vmatpush1.msra.mxu0 %v2899_v45  ;;  %1766 = vmatpush1.msra.mxu1 %v2902_v46 }
 0x5e6   :  { %1696 = vmatprep.subr.mxu0 %v2905_v47  ;;  %1767 = vmatprep.subr.mxu1 %v2908_v48 }
 0x5e7   :  { %1697 = vmatpush1.msra.mxu0 %v2911_v49  ;;  %1768 = vmatpush1.msra.mxu1 %v2914_v50 }
 0x5e8   :  { %1698 = vmatprep.subr.mxu0 %v3432_v2  ;;  %1769 = vmatprep.subr.mxu1 %v3433_v56  ;;  %v3459_v56 = vld [vmem:[#allocation57_spill] sm:$0xff] }
 0x5e9   :  { %1699 = vmatpush1.msra.mxu0 %v3434_v4  ;;  %1770 = vmatpush1.msra.mxu1 %v3435_v7  ;;  %v3460_v7 = vld [vmem:[#allocation55_spill] sm:$0xff] }
 0x5ea   :  { %1700 = vmatprep.subr.mxu0 %v3436_v62  ;;  %1771 = vmatprep.subr.mxu1 %v3437_v58 }
 0x5eb   :  { %1701 = vmatpush1.msra.mxu0 %v3438_v51  ;;  %1772 = vmatpush1.msra.mxu1 %v3439_v1 }
 0x5ec   :  { %1702 = vmatprep.subr.mxu0 %v3440_v33  ;;  %1773 = vmatprep.subr.mxu1 %v3441_v3 }
 0x5ed   :  { %1703 = vmatpush1.msra.mxu0 %v3442_v5  ;;  %1774 = vmatpush1.msra.mxu1 %v3443_v35 }
 0x5ee   :  { %1704 = vmatprep.subr.mxu0 %v3444_v0  ;;  %1775 = vmatprep.subr.mxu1 %v3445_v24 }
 0x5ef   :  { %1705 = vmatpush1.msra.mxu0 %v3446_v42  ;;  %1776 = vmatpush1.msra.mxu1 %v3447_v57 }
 0x5f0   :  { %1706 = vmatprep.subr.mxu0 %v3448_v61  ;;  %1777 = vmatprep.subr.mxu1 %v3449_v60 }
 0x5f1   :  { %1707 = vmatpush1.msra.mxu0 %v3450_v63  ;;  %1740 = vmatprep.mubr.f32.mxu0 %v3451_v59 }
 0x5f2   :  { %1778 = vmatpush1.msra.mxu1 %v3452_v55  ;;  %1811 = vmatprep.mubr.f32.mxu1 %v3451_v59  ;;  %v1897_v59 = vld [vmem:[%s3162_s4 + $0x7] ss:$0 sm:$0xff] }
 0x692   :  { %v1563_v26 = vpop.f32.mrf.mxu0  ;;  %v1634_v27 = vpop.f32.mrf.mxu1 }
 0x693   :  { %v1639_v29 = vadd.f32 %v1563_v26, %v3453_v28  ;;  %v1641_v43 = vadd.f32 %v1634_v27, %v3456_v41  ;;  %v1898_v28 = vld [vmem:[#allocation3] ss:$0 sm:$0xff] }
 0x694   :  { %v1565_v31 = vpop.f32.mrf.mxu0  ;;  %v1636_v8 = vpop.f32.mrf.mxu1 }
 0x695   :  { %v1643_v15 = vmul.f32 0.5, %v1639_v29  ;;  %v1640_v37 = vadd.f32 %v1565_v31, %v3454_v36  ;;  %v1642_v40 = vadd.f32 %v1636_v8, %v3455_v39  ;;  %v1645_v44 = vmul.f32 0.5, %v1641_v43 }
 0x697   :  { %1963 = vtanh.f32 %v1643_v15  ;;  %v1644_v38 = vmul.f32 0.5, %v1640_v37 }
 0x699   :  { %1965 = vtanh.f32 %v1644_v38 }
 0x69a   :  { %1967 = vtanh.f32 %v1642_v40 }
 0x69b   :  { %1969 = vtanh.f32 %v1645_v44 }
 0x6a4   :  { %v1964_v45 = vpop.eup %1963 }
 0x6a5   :  { %v1649_v46 = vmul.f32 0.5, %v1964_v45 }
 0x6a6   :  { %v1966_v47 = vpop.eup %1965 }
 0x6a7   :  { %v1652_v48 = vadd.f32 0.5, %v1649_v46  ;;  %v1650_v49 = vmul.f32 0.5, %v1966_v47  ;;  %v1968_v50 = vpop.eup %1967 }
 0x6a8   :  { %v1970_v30 = vpop.eup %1969 }
 0x6a9   :  { %v1653_v16 = vadd.f32 0.5, %v1650_v49  ;;  %v1657_v25 = vmul.f32 %v1968_v50, %v1652_v48  ;;  %v1651_v34 = vmul.f32 0.5, %v1970_v30 }
 0x6ab   :  { %v1656_v52 = vmul.f32 %v1653_v16, %v3066_v20  ;;  %v1654_v32 = vadd.f32 0.5, %v1651_v34 }
 0x6ad   :  { %v1658_v12 = vadd.f32 %v1657_v25, %v1656_v52 }
 0x6af   :  { %1971 = vtanh.f32 %v1658_v12 }
 0x6bc   :  { %v1972_v18 = vpop.eup %1971 }
 0x6bd   :  { %v1660_v23 = vmul.f32 %v1972_v18, %v1654_v32 }
 0x6bf   :  { %1741 = vmatmul.mubr.f32.vlgmr.msra.gmra.mxu0 %v1660_v23  ;;  %1812 = vmatmul.mubr.f32.vlgmr.msra.gmra.mxu1 %v1660_v23  ;;  %v1669_v10 = vmul.f32 %v1895_v17, %v1660_v23 }
 0x6c1   :  { %v1670_v11 = vadd.f32 %v1669_v10, %v3077_v13 }
 0x77f   :  { %v1742_v22 = vpop.f32.mrf.mxu0  ;;  %v1813_v14 = vpop.f32.mrf.mxu1 }
 0x780   :  { %v1818_v20 = vadd.f32 %v1742_v22, %v3457_v6  ;;  %v1820_v62 = vadd.f32 %v1813_v14, %v3460_v7 }
 0x781   :  { %v1744_v19 = vpop.f32.mrf.mxu0  ;;  %v1815_v21 = vpop.f32.mrf.mxu1 }
 0x782   :  { %v1822_v54 = vmul.f32 0.5, %v1818_v20  ;;  %v1819_v53 = vadd.f32 %v1744_v19, %v3458_v9  ;;  %v1821_v4 = vadd.f32 %v1815_v21, %v3459_v56  ;;  %v1824_v58 = vmul.f32 0.5, %v1820_v62 }
 0x784   :  { %1973 = vtanh.f32 %v1822_v54  ;;  %v1823_v2 = vmul.f32 0.5, %v1819_v53 }
 0x786   :  { %1975 = vtanh.f32 %v1823_v2 }
 0x787   :  { %1977 = vtanh.f32 %v1821_v4 }
 0x788   :  { %1979 = vtanh.f32 %v1824_v58 }
 0x791   :  { %v1974_v51 = vpop.eup %1973 }
 0x792   :  { %v1828_v13 = vmul.f32 0.5, %v1974_v51 }
 0x793   :  { %v1976_v1 = vpop.eup %1975 }
 0x794   :  { %v1831_v33 = vadd.f32 0.5, %v1828_v13  ;;  %v1829_v3 = vmul.f32 0.5, %v1976_v1  ;;  %v1978_v5 = vpop.eup %1977 }
 0x795   :  { %v1980_v57 = vpop.eup %1979 }
 0x796   :  { %v1832_v35 = vadd.f32 0.5, %v1829_v3  ;;  %v1836_v0 = vmul.f32 %v1978_v5, %v1831_v33  ;;  %v1830_v61 = vmul.f32 0.5, %v1980_v57 }
 0x798   :  { %v1835_v24 = vmul.f32 %v1832_v35, %v1658_v12  ;;  %v1833_v60 = vadd.f32 0.5, %v1830_v61 }
 0x79a   :  { %v1837_v42 = vadd.f32 %v1836_v0, %v1835_v24 }
 0x79c   :  { %1981 = vtanh.f32 %v1837_v42 }
 0x7a9   :  { %v1982_v63 = vpop.eup %1981 }
 0x7aa   :  { %v1839_v55 = vmul.f32 %v1982_v63, %v1833_v60 }
 0x7ac   :  { %v1848_v26 = vmul.f32 %v1897_v59, %v1839_v55 }
 0x7ae   :  { %v1849_v27 = vadd.f32 %v1848_v26, %v1670_v11 }
 0x7b0   :  { %1850 = vadd.xlane.f32.xlu0 %v1849_v27 }
 0x839   :  { %v1851_v29 = vpop.xlane.xlu0 %1850 }
 0x83a   :  { %v1859_v31 = vadd.f32 %v1898_v28, %v1851_v29 }
 0x83c   :  { %1861 = vst.msk [vmem:[%s3164_s6] sm:$0xff] %vm1860_vm1, %v1859_v31 }
 0x83d   :  { %1866 = vsyncpa [#allocation5], 1 }

</bundles_post_ra>
